<compile_context>
chip_gen: v6e
topology: v6e:2x2x1
jax: 0.10.0
libtpu: 0.0.40
codegen_flags: <defaults>
</compile_context>

<pallas_src>
import numpy as np
import jax
import jax.numpy as jnp
from jax.experimental import pallas as pl
from jax.experimental.pallas import tpu as pltpu

KK = 4  # conv kernel size (4x4); every layer is Conv2d(k=4, s=2, p=1, bias=False)


# ---------------------------------------------------------------------------
# Host-side parameter preparation (fold BN, build banded matmul operands)
# ---------------------------------------------------------------------------
def _snap_bf16(a):
    """Snap values to the bf16 grid (test hygiene: bf16 operands then multiply
    exactly on the MXU, so the correctness check is precision-mode agnostic)."""
    return np.asarray(jnp.asarray(a, jnp.bfloat16).astype(jnp.float32))


def init_params(key, out_channels_convolution=8):
    """Synthetic Conv / BatchNorm(eval) parameters for the 4 layers."""
    C = out_channels_convolution
    chans = [(1, C), (C, 2 * C), (2 * C, 4 * C), (4 * C, 8 * C)]
    params = []
    for li, (cin, cout) in enumerate(chans):
        key, kw, kg, kb, km, kv = jax.random.split(key, 6)
        w = 0.05 * jax.random.normal(kw, (cout, cin, KK, KK), jnp.float32)
        if li == 0:                                   # first conv: no BatchNorm
            scale = jnp.ones((cout,), jnp.float32)
            shift = jnp.zeros((cout,), jnp.float32)
        else:                                         # BatchNorm2d, eval mode
            gamma = 1.0 + 0.1 * jax.random.normal(kg, (cout,), jnp.float32)
            beta = 0.1 * jax.random.normal(kb, (cout,), jnp.float32)
            mean = 0.1 * jax.random.normal(km, (cout,), jnp.float32)
            var = jnp.abs(1.0 + 0.1 * jax.random.normal(kv, (cout,), jnp.float32))
            scale = gamma * jax.lax.rsqrt(var + 1e-5)
            shift = beta - mean * scale
        params.append((w, scale, shift))
    return params


def fold_and_pack(params, H, W):
    """Fold BN into the conv weights and build per-layer kernel operands.

    Column (lane) layout of every activation slab is "interior-first":
      lanes [0, W*Cin)          : interior padded columns 1..W
      lanes [W*Cin, (W+2)*Cin)  : pad columns 0 and W+1 (always zero)
    so layer l's banded matrix directly produces layer l+1's slab rows
    (including its zero pad columns) and activation stores start at lane 0.

    Returns
      dims   : per-layer static geometry
      m_list : [(4, (W+2)*Cin, OutWp)] bf16 banded weights (BN scale folded)
      b_list : [(1, OutWp)]            f32 folded BN shift (zero in pad cols)
      eff    : [(w_eff OIHW, shift)]   effective params for the reference
    """
    dims, m_list, b_list, eff = [], [], [], []
    n = len(params)
    h, w = H, W
    for li, (wgt, scale, shift) in enumerate(params):
        assert h % 2 == 0 and w % 2 == 0
        wgt = np.asarray(wgt, np.float32)
        scale = np.asarray(scale, np.float32).reshape(-1)
        shift = np.asarray(shift, np.float32).reshape(-1)
        cout, cin = wgt.shape[0], wgt.shape[1]
        ho, wo = h // 2, w // 2
        last = li == n - 1
        kdim = (w + 2) * cin
        outwp = wo * cout if last else (wo + 2) * cout   # + 2*cout zero pad cols

        w_eff = _snap_bf16(wgt * scale[:, None, None, None])   # (Cout,Cin,4,4)
        b_eff = _snap_bf16(shift)                               # (Cout,)

        def lane_block(j):            # padded input column -> lane block
            if j == 0:
                return w              # left pad column parked after the interior
            if j == w + 1:
                return w + 1          # right pad column last
            return j - 1              # interior columns first

        # banded matrix per kernel row di:
        #   M_di[lane_block(2*ow+dj)*Cin + c, ow*Cout + co] = w_eff[co, c, di, dj]
        m = np.zeros((KK, kdim, outwp), np.float32)
        for di in range(KK):
            for dj in range(KK):
                blk = w_eff[:, :, di, dj].T                     # (Cin, Cout)
                for ow in range(wo):
                    lb = lane_block(2 * ow + dj)
                    m[di, lb * cin:(lb + 1) * cin,
                      ow * cout:(ow + 1) * cout] = blk
        brow = np.zeros((1, outwp), np.float32)
        brow[0, :wo * cout] = np.tile(b_eff, wo)

        dims.append(dict(H=h, W=w, Cin=cin, Cout=cout, Ho=ho, Wo=wo,
                         Kdim=kdim, OutWp=outwp))
        m_list.append(jnp.asarray(m, jnp.bfloat16))     # bf16 MXU operand
        b_list.append(jnp.asarray(brow, jnp.float32))   # f32 epilogue operand
        eff.append((jnp.asarray(w_eff), jnp.asarray(b_eff)))
        h, w = ho, wo
    return dims, m_list, b_list, eff


def pack_input(x, d0, B):
    """Lay the (N,1,H,W) input out as per-grid-step layer-0 slabs:
    zero-padded, interior-first columns, rows parity-deinterleaved
    ([even padded rows | odd padded rows], image index innermost).
    Pure layout plumbing; runs once inside the surrounding jit."""
    N = x.shape[0]
    H, W, Cin = d0["H"], d0["W"], d0["Cin"]
    assert Cin == 1 and N % B == 0
    G = N // B
    xp = jnp.zeros((N, H + 2, W + 2), x.dtype)
    xp = xp.at[:, 1:H + 1, 1:W + 1].set(x[:, 0])
    col_order = jnp.asarray(list(range(1, W + 1)) + [0, W + 1])   # interior-first
    xp = xp[:, :, col_order]
    xp = jnp.concatenate([xp[:, 0::2], xp[:, 1::2]], axis=1)      # parity planes
    xp = xp.reshape(G, B, H + 2, W + 2).transpose(0, 2, 1, 3)     # b innermost
    return xp.reshape(G, (H + 2) * B, W + 2).astype(jnp.bfloat16)


# ---------------------------------------------------------------------------
# Fused Pallas kernel: 4 x (conv + folded-BN + ReLU), all in VMEM
# ---------------------------------------------------------------------------
def _make_kernel(dims, B):
    n = len(dims)

    def kernel(x_ref, *refs):
        m_refs = refs[:n]                # (4, Kdim, OutWp) bf16 per layer
        b_refs = refs[n:2 * n]           # (1, OutWp) f32 per layer
        o_ref = refs[2 * n]              # (1, B, OutW_last)
        slabs = refs[2 * n + 1:]         # bf16 VMEM slabs for layers 1..n-1

        # Border-only zeroing: the two pad ROW blocks of each scratch slab
        # (padded row 0 = first B rows of the even plane, padded row H+1 =
        # last B rows of the odd plane).  Interior rows are fully overwritten
        # below, and pad COLUMNS come out of the matmul's zero weight columns.
        for li in range(1, n):
            d = dims[li]
            rows = (d["H"] + 2) * B
            z = jnp.zeros((B, d["Kdim"]), slabs[li - 1].dtype)
            slabs[li - 1][0:B, :] = z
            slabs[li - 1][rows - B:rows, :] = z

        # Layer 0 reads the host-packed padded slab straight from its block.
        src = x_ref[0]
        for li, d in enumerate(dims):
            Ho = d["Ho"]
            E = (Ho + 1) * B                      # rows per parity plane
            m = m_refs[li]
            # conv(k=4, s=2, p=1) as 4 MXU matmuls; the parity-deinterleaved
            # slab makes every LHS window a CONTIGUOUS row slice with
            # M = B*Ho output rows of the whole batch tile per matmul.
            acc = jnp.dot(src[0:Ho * B, :], m[0],
                          preferred_element_type=jnp.float32)            # di=0
            acc += jnp.dot(src[E:E + Ho * B, :], m[1],
                           preferred_element_type=jnp.float32)           # di=1
            acc += jnp.dot(src[B:E, :], m[2],
                           preferred_element_type=jnp.float32)           # di=2
            acc += jnp.dot(src[E + B:2 * E, :], m[3],
                           preferred_element_type=jnp.float32)           # di=3
            # folded BN shift + ReLU, kept in f32 (v5e VPU has no bf16 path)
            out = jnp.maximum(acc + b_refs[li][...], 0.0)    # (B*Ho, OutWp)

            if li + 1 < n:
                nxt = slabs[li]
                out_b = out.astype(nxt.dtype)
                En = (dims[li + 1]["H"] // 2 + 1) * B
                # Output row block oh (B rows, contiguous) becomes padded row
                # oh+1 of the next slab: even plane for odd oh, odd plane for
                # even oh.  All stores are contiguous full-width B-row blocks.
                for oh in range(Ho):
                    k = oh + 1
                    dst = (0 if k % 2 == 0 else En) + (k // 2) * B
                    nxt[dst:dst + B, :] = out_b[oh * B:(oh + 1) * B, :]
                src = nxt
            else:
                o_ref[0] = out.astype(o_ref.dtype)           # (B, 8*C); Ho == 1

    return kernel


def build_forward(dims, batch, tile_b):
    n = len(dims)
    d0, dl = dims[0], dims[-1]
    # TODO(synk): for inputs whose final feature map is larger than 1x1 the
    # NCHW Flatten order would need an extra output-column permutation.
    assert dl["Ho"] == 1 and dl["Wo"] == 1
    assert batch % tile_b == 0
    B, G = tile_b, batch // tile_b
    out_w = dl["OutWp"]
    rows0, k0 = (d0["H"] + 2) * B, d0["Kdim"]

    in_specs = [pl.BlockSpec((1, rows0, k0), lambda g: (g, 0, 0))]
    in_specs += [pl.BlockSpec((KK, d["Kdim"], d["OutWp"]), lambda g: (0, 0, 0))
                 for d in dims]
    in_specs += [pl.BlockSpec((1, d["OutWp"]), lambda g: (0, 0)) for d in dims]
    out_specs = pl.BlockSpec((1, B, out_w), lambda g: (g, 0, 0))
    scratch = [pltpu.VMEM(((d["H"] + 2) * B, d["Kdim"]), jnp.bfloat16)
               for d in dims[1:]]

    flops = 2 * batch * sum(KK * d["Ho"] * d["Kdim"] * d["OutWp"] for d in dims)
    bytes_accessed = (2 * G * rows0 * k0
                      + sum(2 * KK * d["Kdim"] * d["OutWp"] + 4 * d["OutWp"]
                            for d in dims)
                      + 4 * batch * out_w)

    call = pl.pallas_call(
        _make_kernel(dims, B),
        out_shape=jax.ShapeDtypeStruct((G, B, out_w), jnp.float32),
        grid=(G,),
        in_specs=in_specs,
        out_specs=out_specs,
        scratch_shapes=scratch,
        compiler_params=pltpu.CompilerParams(
            # one independent tile of B images per grid step -> megacore split
            dimension_semantics=("parallel",)),
        cost_estimate=pl.CostEstimate(flops=flops, transcendentals=0,
                                      bytes_accessed=bytes_accessed),
    )

    def forward(x, m_list, b_list):
        x_slab = pack_input(x, dims[0], B)          # layout plumbing, in-jit
        y = call(x_slab, *m_list, *b_list)
        return y.reshape(batch, out_w)              # nn.Flatten(start_dim=1)

    return forward


# ---------------------------------------------------------------------------
# Pure-JAX reference (lax conv) for the correctness check
# ---------------------------------------------------------------------------
def reference_forward(x, eff):
    """Intermediate activations are rounded to bf16 to model the kernel's bf16
    activation slabs (weights/input are bf16-snapped, so individual products
    are exact in both paths; only f32 accumulation order differs)."""
    h = x
    n = len(eff)
    for li, (w_eff, b_eff) in enumerate(eff):
        y = jax.lax.conv_general_dilated(
            h, w_eff, window_strides=(2, 2), padding=((1, 1), (1, 1)),
            dimension_numbers=("NCHW", "OIHW", "NCHW"),
            precision=jax.lax.Precision.HIGHEST)
        h = jnp.maximum(y + b_eff.reshape(1, -1, 1, 1), 0.0)
        if li + 1 < n:
            h = h.astype(jnp.bfloat16).astype(jnp.float32)
    return h.reshape(h.shape[0], -1)


if __name__ == "__main__":
    key = jax.random.PRNGKey(0)
    k_params, k_x = jax.random.split(key)

    C = 8                        # out_channels_convolution (kept small)
    N, H, W = 4, 16, 16          # (N, 1, 16, 16) -> four stride-2 convs -> 1x1
    B = 2                        # images per grid step; raise to 128-256 in prod

    params = init_params(k_params, out_channels_convolution=C)
    dims, m_list, b_list, eff = fold_and_pack(params, H, W)

    x = jax.random.normal(k_x, (N, 1, H, W), jnp.float32)
    # snap the input to bf16-representable values (see _snap_bf16 docstring)
    x = x.astype(jnp.bfloat16).astype(jnp.float32)

    forward = jax.jit(build_forward(dims, batch=N, tile_b=B))
    out = jax.block_until_ready(forward(x, m_list, b_list))

    ref = jax.block_until_ready(reference_forward(x, eff))
    assert out.shape == (N, 8 * C), f"unexpected output shape {out.shape}"
    max_err = float(jnp.max(jnp.abs(out - ref)))
    # bf16 products are exact; remaining differences are f32 accumulation
    # order (and, rarely, a 1-ulp bf16 rounding flip in an intermediate).
    assert jnp.allclose(out, ref, rtol=2e-3, atol=3e-4), (
        f"mismatch vs reference, max |err| = {max_err}")

    print("KERNEL_OK")
</pallas_src>

<mosaic_0001>
module attributes {stable_mosaic.version = 11 : i64} {
  func.func @kernel(%arg0: i32, %arg1: memref<1x36x18xbf16, #tpu.memory_space<vmem>>, %arg2: memref<4x18x80xbf16, #tpu.memory_space<vmem>>, %arg3: memref<4x80x96xbf16, #tpu.memory_space<vmem>>, %arg4: memref<4x96x128xbf16, #tpu.memory_space<vmem>>, %arg5: memref<4x128x64xbf16, #tpu.memory_space<vmem>>, %arg6: memref<1x80xf32, #tpu.memory_space<vmem>>, %arg7: memref<1x96xf32, #tpu.memory_space<vmem>>, %arg8: memref<1x128xf32, #tpu.memory_space<vmem>>, %arg9: memref<1x64xf32, #tpu.memory_space<vmem>>, %arg10: memref<1x2x64xf32, #tpu.memory_space<vmem>>, %arg11: memref<20x80xbf16, #tpu.memory_space<vmem>>, %arg12: memref<12x96xbf16, #tpu.memory_space<vmem>>, %arg13: memref<8x128xbf16, #tpu.memory_space<vmem>>) attributes {dimension_semantics = [#tpu.dimension_semantics<parallel>], iteration_bounds = array<i64: 2>, scalar_prefetch = 0 : i64, scratch_operands = 3 : i64, tpu.core_type = #tpu.core_type<tc>, window_params = [{transform_indices = @transform_0, window_bounds = array<i64: 1, 36, 18>}, {pipeline_mode = #tpu.pipeline_mode<synchronous>, transform_indices = @transform_1, window_bounds = array<i64: 4, 18, 80>}, {pipeline_mode = #tpu.pipeline_mode<synchronous>, transform_indices = @transform_2, window_bounds = array<i64: 4, 80, 96>}, {pipeline_mode = #tpu.pipeline_mode<synchronous>, transform_indices = @transform_3, window_bounds = array<i64: 4, 96, 128>}, {pipeline_mode = #tpu.pipeline_mode<synchronous>, transform_indices = @transform_4, window_bounds = array<i64: 4, 128, 64>}, {pipeline_mode = #tpu.pipeline_mode<synchronous>, transform_indices = @transform_5, window_bounds = array<i64: 1, 80>}, {pipeline_mode = #tpu.pipeline_mode<synchronous>, transform_indices = @transform_6, window_bounds = array<i64: 1, 96>}, {pipeline_mode = #tpu.pipeline_mode<synchronous>, transform_indices = @transform_7, window_bounds = array<i64: 1, 128>}, {pipeline_mode = #tpu.pipeline_mode<synchronous>, transform_indices = @transform_8, window_bounds = array<i64: 1, 64>}, {transform_indices = @transform_9, window_bounds = array<i64: 1, 2, 64>}]} {
    %cst = arith.constant 0.000000e+00 : bf16
    %0 = vector.broadcast %cst : bf16 to vector<2x80xbf16>
    %c0 = arith.constant 0 : index
    %c0_0 = arith.constant 0 : index
    %1 = vector.load %arg11[%c0, %c0_0] : memref<20x80xbf16, #tpu.memory_space<vmem>>, vector<2x80xbf16>
    tpu.vector_store %arg11[%c0, %c0_0], %0 {strides = array<i32>} : memref<20x80xbf16, #tpu.memory_space<vmem>>, vector<2x80xbf16>,
    %c18 = arith.constant 18 : index
    %c0_1 = arith.constant 0 : index
    %2 = vector.load %arg11[%c18, %c0_1] : memref<20x80xbf16, #tpu.memory_space<vmem>>, vector<2x80xbf16>
    tpu.vector_store %arg11[%c18, %c0_1], %0 {strides = array<i32>} : memref<20x80xbf16, #tpu.memory_space<vmem>>, vector<2x80xbf16>,
    %cst_2 = arith.constant 0.000000e+00 : bf16
    %3 = vector.broadcast %cst_2 : bf16 to vector<2x96xbf16>
    %c0_3 = arith.constant 0 : index
    %c0_4 = arith.constant 0 : index
    %4 = vector.load %arg12[%c0_3, %c0_4] : memref<12x96xbf16, #tpu.memory_space<vmem>>, vector<2x96xbf16>
    tpu.vector_store %arg12[%c0_3, %c0_4], %3 {strides = array<i32>} : memref<12x96xbf16, #tpu.memory_space<vmem>>, vector<2x96xbf16>,
    %c10 = arith.constant 10 : index
    %c0_5 = arith.constant 0 : index
    %5 = vector.load %arg12[%c10, %c0_5] : memref<12x96xbf16, #tpu.memory_space<vmem>>, vector<2x96xbf16>
    tpu.vector_store %arg12[%c10, %c0_5], %3 {strides = array<i32>} : memref<12x96xbf16, #tpu.memory_space<vmem>>, vector<2x96xbf16>,
    %cst_6 = arith.constant 0.000000e+00 : bf16
    %6 = vector.broadcast %cst_6 : bf16 to vector<2x128xbf16>
    %c0_7 = arith.constant 0 : index
    %c0_8 = arith.constant 0 : index
    %7 = vector.load %arg13[%c0_7, %c0_8] : memref<8x128xbf16, #tpu.memory_space<vmem>>, vector<2x128xbf16>
    tpu.vector_store %arg13[%c0_7, %c0_8], %6 {strides = array<i32>} : memref<8x128xbf16, #tpu.memory_space<vmem>>, vector<2x128xbf16>,
    %c6 = arith.constant 6 : index
    %c0_9 = arith.constant 0 : index
    %8 = vector.load %arg13[%c6, %c0_9] : memref<8x128xbf16, #tpu.memory_space<vmem>>, vector<2x128xbf16>
    tpu.vector_store %arg13[%c6, %c0_9], %6 {strides = array<i32>} : memref<8x128xbf16, #tpu.memory_space<vmem>>, vector<2x128xbf16>,
    %c0_10 = arith.constant 0 : index
    %c0_11 = arith.constant 0 : index
    %c0_12 = arith.constant 0 : index
    %9 = vector.load %arg1[%c0_10, %c0_11, %c0_12] : memref<1x36x18xbf16, #tpu.memory_space<vmem>>, vector<1x36x18xbf16>
    %10 = vector.shape_cast %9 : vector<1x36x18xbf16> to vector<36x18xbf16>
    %11 = vector.extract_strided_slice %10 {offsets = [0, 0], sizes = [16, 18], strides = [1, 1]} : vector<36x18xbf16> to vector<16x18xbf16>
    %c0_13 = arith.constant 0 : index
    %c0_14 = arith.constant 0 : index
    %c0_15 = arith.constant 0 : index
    %12 = vector.load %arg2[%c0_13, %c0_14, %c0_15] : memref<4x18x80xbf16, #tpu.memory_space<vmem>>, vector<1x18x80xbf16>
    %13 = vector.shape_cast %12 : vector<1x18x80xbf16> to vector<18x80xbf16>
    %cst_16 = arith.constant dense<0.000000e+00> : vector<16x80xf32>
    %14 = tpu.matmul %11, %13, %cst_16 {dimension_numbers = #tpu.dot_dimension_numbers<[1], [0], [0], [1], [0, 0, 1, 1], [], []>} : vector<16x18xbf16>, vector<18x80xbf16>, vector<16x80xf32> -> vector<16x80xf32>
    %15 = vector.extract_strided_slice %10 {offsets = [18, 0], sizes = [16, 18], strides = [1, 1]} : vector<36x18xbf16> to vector<16x18xbf16>
    %c1 = arith.constant 1 : index
    %c0_17 = arith.constant 0 : index
    %c0_18 = arith.constant 0 : index
    %16 = vector.load %arg2[%c1, %c0_17, %c0_18] : memref<4x18x80xbf16, #tpu.memory_space<vmem>>, vector<1x18x80xbf16>
    %17 = vector.shape_cast %16 : vector<1x18x80xbf16> to vector<18x80xbf16>
    %cst_19 = arith.constant dense<0.000000e+00> : vector<16x80xf32>
    %18 = tpu.matmul %15, %17, %cst_19 {dimension_numbers = #tpu.dot_dimension_numbers<[1], [0], [0], [1], [0, 0, 1, 1], [], []>} : vector<16x18xbf16>, vector<18x80xbf16>, vector<16x80xf32> -> vector<16x80xf32>
    %19 = arith.addf %14, %18 : vector<16x80xf32>
    %20 = vector.extract_strided_slice %10 {offsets = [2, 0], sizes = [16, 18], strides = [1, 1]} : vector<36x18xbf16> to vector<16x18xbf16>
    %c2 = arith.constant 2 : index
    %c0_20 = arith.constant 0 : index
    %c0_21 = arith.constant 0 : index
    %21 = vector.load %arg2[%c2, %c0_20, %c0_21] : memref<4x18x80xbf16, #tpu.memory_space<vmem>>, vector<1x18x80xbf16>
    %22 = vector.shape_cast %21 : vector<1x18x80xbf16> to vector<18x80xbf16>
    %cst_22 = arith.constant dense<0.000000e+00> : vector<16x80xf32>
    %23 = tpu.matmul %20, %22, %cst_22 {dimension_numbers = #tpu.dot_dimension_numbers<[1], [0], [0], [1], [0, 0, 1, 1], [], []>} : vector<16x18xbf16>, vector<18x80xbf16>, vector<16x80xf32> -> vector<16x80xf32>
    %24 = arith.addf %19, %23 : vector<16x80xf32>
    %25 = vector.extract_strided_slice %10 {offsets = [20, 0], sizes = [16, 18], strides = [1, 1]} : vector<36x18xbf16> to vector<16x18xbf16>
    %c3 = arith.constant 3 : index
    %c0_23 = arith.constant 0 : index
    %c0_24 = arith.constant 0 : index
    %26 = vector.load %arg2[%c3, %c0_23, %c0_24] : memref<4x18x80xbf16, #tpu.memory_space<vmem>>, vector<1x18x80xbf16>
    %27 = vector.shape_cast %26 : vector<1x18x80xbf16> to vector<18x80xbf16>
    %cst_25 = arith.constant dense<0.000000e+00> : vector<16x80xf32>
    %28 = tpu.matmul %25, %27, %cst_25 {dimension_numbers = #tpu.dot_dimension_numbers<[1], [0], [0], [1], [0, 0, 1, 1], [], []>} : vector<16x18xbf16>, vector<18x80xbf16>, vector<16x80xf32> -> vector<16x80xf32>
    %29 = arith.addf %24, %28 : vector<16x80xf32>
    %c0_26 = arith.constant 0 : index
    %c0_27 = arith.constant 0 : index
    %30 = vector.load %arg6[%c0_26, %c0_27] : memref<1x80xf32, #tpu.memory_space<vmem>>, vector<1x80xf32>
    %31 = vector.broadcast %30 : vector<1x80xf32> to vector<16x80xf32>
    %32 = arith.addf %29, %31 : vector<16x80xf32>
    %cst_28 = arith.constant 0.000000e+00 : f32
    %33 = vector.broadcast %cst_28 : f32 to vector<16x80xf32>
    %34 = arith.maximumf %32, %33 : vector<16x80xf32>
    %35 = arith.truncf %34 : vector<16x80xf32> to vector<16x80xbf16>
    %36 = vector.extract_strided_slice %35 {offsets = [0, 0], sizes = [2, 80], strides = [1, 1]} : vector<16x80xbf16> to vector<2x80xbf16>
    %c10_29 = arith.constant 10 : index
    %c0_30 = arith.constant 0 : index
    %37 = vector.load %arg11[%c10_29, %c0_30] : memref<20x80xbf16, #tpu.memory_space<vmem>>, vector<2x80xbf16>
    tpu.vector_store %arg11[%c10_29, %c0_30], %36 {strides = array<i32>} : memref<20x80xbf16, #tpu.memory_space<vmem>>, vector<2x80xbf16>,
    %38 = vector.extract_strided_slice %35 {offsets = [2, 0], sizes = [2, 80], strides = [1, 1]} : vector<16x80xbf16> to vector<2x80xbf16>
    %c2_31 = arith.constant 2 : index
    %c0_32 = arith.constant 0 : index
    %39 = vector.load %arg11[%c2_31, %c0_32] : memref<20x80xbf16, #tpu.memory_space<vmem>>, vector<2x80xbf16>
    tpu.vector_store %arg11[%c2_31, %c0_32], %38 {strides = array<i32>} : memref<20x80xbf16, #tpu.memory_space<vmem>>, vector<2x80xbf16>,
    %40 = vector.extract_strided_slice %35 {offsets = [4, 0], sizes = [2, 80], strides = [1, 1]} : vector<16x80xbf16> to vector<2x80xbf16>
    %c12 = arith.constant 12 : index
    %c0_33 = arith.constant 0 : index
    %41 = vector.load %arg11[%c12, %c0_33] : memref<20x80xbf16, #tpu.memory_space<vmem>>, vector<2x80xbf16>
    tpu.vector_store %arg11[%c12, %c0_33], %40 {strides = array<i32>} : memref<20x80xbf16, #tpu.memory_space<vmem>>, vector<2x80xbf16>,
    %42 = vector.extract_strided_slice %35 {offsets = [6, 0], sizes = [2, 80], strides = [1, 1]} : vector<16x80xbf16> to vector<2x80xbf16>
    %c4 = arith.constant 4 : index
    %c0_34 = arith.constant 0 : index
    %43 = vector.load %arg11[%c4, %c0_34] : memref<20x80xbf16, #tpu.memory_space<vmem>>, vector<2x80xbf16>
    tpu.vector_store %arg11[%c4, %c0_34], %42 {strides = array<i32>} : memref<20x80xbf16, #tpu.memory_space<vmem>>, vector<2x80xbf16>,
    %44 = vector.extract_strided_slice %35 {offsets = [8, 0], sizes = [2, 80], strides = [1, 1]} : vector<16x80xbf16> to vector<2x80xbf16>
    %c14 = arith.constant 14 : index
    %c0_35 = arith.constant 0 : index
    %45 = vector.load %arg11[%c14, %c0_35] : memref<20x80xbf16, #tpu.memory_space<vmem>>, vector<2x80xbf16>
    tpu.vector_store %arg11[%c14, %c0_35], %44 {strides = array<i32>} : memref<20x80xbf16, #tpu.memory_space<vmem>>, vector<2x80xbf16>,
    %46 = vector.extract_strided_slice %35 {offsets = [10, 0], sizes = [2, 80], strides = [1, 1]} : vector<16x80xbf16> to vector<2x80xbf16>
    %c6_36 = arith.constant 6 : index
    %c0_37 = arith.constant 0 : index
    %47 = vector.load %arg11[%c6_36, %c0_37] : memref<20x80xbf16, #tpu.memory_space<vmem>>, vector<2x80xbf16>
    tpu.vector_store %arg11[%c6_36, %c0_37], %46 {strides = array<i32>} : memref<20x80xbf16, #tpu.memory_space<vmem>>, vector<2x80xbf16>,
    %48 = vector.extract_strided_slice %35 {offsets = [12, 0], sizes = [2, 80], strides = [1, 1]} : vector<16x80xbf16> to vector<2x80xbf16>
    %c16 = arith.constant 16 : index
    %c0_38 = arith.constant 0 : index
    %49 = vector.load %arg11[%c16, %c0_38] : memref<20x80xbf16, #tpu.memory_space<vmem>>, vector<2x80xbf16>
    tpu.vector_store %arg11[%c16, %c0_38], %48 {strides = array<i32>} : memref<20x80xbf16, #tpu.memory_space<vmem>>, vector<2x80xbf16>,
    %50 = vector.extract_strided_slice %35 {offsets = [14, 0], sizes = [2, 80], strides = [1, 1]} : vector<16x80xbf16> to vector<2x80xbf16>
    %c8 = arith.constant 8 : index
    %c0_39 = arith.constant 0 : index
    %51 = vector.load %arg11[%c8, %c0_39] : memref<20x80xbf16, #tpu.memory_space<vmem>>, vector<2x80xbf16>
    tpu.vector_store %arg11[%c8, %c0_39], %50 {strides = array<i32>} : memref<20x80xbf16, #tpu.memory_space<vmem>>, vector<2x80xbf16>,
    %c0_40 = arith.constant 0 : index
    %c0_41 = arith.constant 0 : index
    %52 = vector.load %arg11[%c0_40, %c0_41] : memref<20x80xbf16, #tpu.memory_space<vmem>>, vector<8x80xbf16>
    %c0_42 = arith.constant 0 : index
    %c0_43 = arith.constant 0 : index
    %c0_44 = arith.constant 0 : index
    %53 = vector.load %arg3[%c0_42, %c0_43, %c0_44] : memref<4x80x96xbf16, #tpu.memory_space<vmem>>, vector<1x80x96xbf16>
    %54 = vector.shape_cast %53 : vector<1x80x96xbf16> to vector<80x96xbf16>
    %cst_45 = arith.constant dense<0.000000e+00> : vector<8x96xf32>
    %55 = tpu.matmul %52, %54, %cst_45 {dimension_numbers = #tpu.dot_dimension_numbers<[1], [0], [0], [1], [0, 0, 1, 1], [], []>} : vector<8x80xbf16>, vector<80x96xbf16>, vector<8x96xf32> -> vector<8x96xf32>
    %c10_46 = arith.constant 10 : index
    %c0_47 = arith.constant 0 : index
    %56 = vector.load %arg11[%c10_46, %c0_47] : memref<20x80xbf16, #tpu.memory_space<vmem>>, vector<8x80xbf16>
    %c1_48 = arith.constant 1 : index
    %c0_49 = arith.constant 0 : index
    %c0_50 = arith.constant 0 : index
    %57 = vector.load %arg3[%c1_48, %c0_49, %c0_50] : memref<4x80x96xbf16, #tpu.memory_space<vmem>>, vector<1x80x96xbf16>
    %58 = vector.shape_cast %57 : vector<1x80x96xbf16> to vector<80x96xbf16>
    %cst_51 = arith.constant dense<0.000000e+00> : vector<8x96xf32>
    %59 = tpu.matmul %56, %58, %cst_51 {dimension_numbers = #tpu.dot_dimension_numbers<[1], [0], [0], [1], [0, 0, 1, 1], [], []>} : vector<8x80xbf16>, vector<80x96xbf16>, vector<8x96xf32> -> vector<8x96xf32>
    %60 = arith.addf %55, %59 : vector<8x96xf32>
    %c2_52 = arith.constant 2 : index
    %c0_53 = arith.constant 0 : index
    %61 = vector.load %arg11[%c2_52, %c0_53] : memref<20x80xbf16, #tpu.memory_space<vmem>>, vector<8x80xbf16>
    %c2_54 = arith.constant 2 : index
    %c0_55 = arith.constant 0 : index
    %c0_56 = arith.constant 0 : index
    %62 = vector.load %arg3[%c2_54, %c0_55, %c0_56] : memref<4x80x96xbf16, #tpu.memory_space<vmem>>, vector<1x80x96xbf16>
    %63 = vector.shape_cast %62 : vector<1x80x96xbf16> to vector<80x96xbf16>
    %cst_57 = arith.constant dense<0.000000e+00> : vector<8x96xf32>
    %64 = tpu.matmul %61, %63, %cst_57 {dimension_numbers = #tpu.dot_dimension_numbers<[1], [0], [0], [1], [0, 0, 1, 1], [], []>} : vector<8x80xbf16>, vector<80x96xbf16>, vector<8x96xf32> -> vector<8x96xf32>
    %65 = arith.addf %60, %64 : vector<8x96xf32>
    %c12_58 = arith.constant 12 : index
    %c0_59 = arith.constant 0 : index
    %66 = vector.load %arg11[%c12_58, %c0_59] : memref<20x80xbf16, #tpu.memory_space<vmem>>, vector<8x80xbf16>
    %c3_60 = arith.constant 3 : index
    %c0_61 = arith.constant 0 : index
    %c0_62 = arith.constant 0 : index
    %67 = vector.load %arg3[%c3_60, %c0_61, %c0_62] : memref<4x80x96xbf16, #tpu.memory_space<vmem>>, vector<1x80x96xbf16>
    %68 = vector.shape_cast %67 : vector<1x80x96xbf16> to vector<80x96xbf16>
    %cst_63 = arith.constant dense<0.000000e+00> : vector<8x96xf32>
    %69 = tpu.matmul %66, %68, %cst_63 {dimension_numbers = #tpu.dot_dimension_numbers<[1], [0], [0], [1], [0, 0, 1, 1], [], []>} : vector<8x80xbf16>, vector<80x96xbf16>, vector<8x96xf32> -> vector<8x96xf32>
    %70 = arith.addf %65, %69 : vector<8x96xf32>
    %c0_64 = arith.constant 0 : index
    %c0_65 = arith.constant 0 : index
    %71 = vector.load %arg7[%c0_64, %c0_65] : memref<1x96xf32, #tpu.memory_space<vmem>>, vector<1x96xf32>
    %72 = vector.broadcast %71 : vector<1x96xf32> to vector<8x96xf32>
    %73 = arith.addf %70, %72 : vector<8x96xf32>
    %cst_66 = arith.constant 0.000000e+00 : f32
    %74 = vector.broadcast %cst_66 : f32 to vector<8x96xf32>
    %75 = arith.maximumf %73, %74 : vector<8x96xf32>
    %76 = arith.truncf %75 : vector<8x96xf32> to vector<8x96xbf16>
    %77 = vector.extract_strided_slice %76 {offsets = [0, 0], sizes = [2, 96], strides = [1, 1]} : vector<8x96xbf16> to vector<2x96xbf16>
    %c6_67 = arith.constant 6 : index
    %c0_68 = arith.constant 0 : index
    %78 = vector.load %arg12[%c6_67, %c0_68] : memref<12x96xbf16, #tpu.memory_space<vmem>>, vector<2x96xbf16>
    tpu.vector_store %arg12[%c6_67, %c0_68], %77 {strides = array<i32>} : memref<12x96xbf16, #tpu.memory_space<vmem>>, vector<2x96xbf16>,
    %79 = vector.extract_strided_slice %76 {offsets = [2, 0], sizes = [2, 96], strides = [1, 1]} : vector<8x96xbf16> to vector<2x96xbf16>
    %c2_69 = arith.constant 2 : index
    %c0_70 = arith.constant 0 : index
    %80 = vector.load %arg12[%c2_69, %c0_70] : memref<12x96xbf16, #tpu.memory_space<vmem>>, vector<2x96xbf16>
    tpu.vector_store %arg12[%c2_69, %c0_70], %79 {strides = array<i32>} : memref<12x96xbf16, #tpu.memory_space<vmem>>, vector<2x96xbf16>,
    %81 = vector.extract_strided_slice %76 {offsets = [4, 0], sizes = [2, 96], strides = [1, 1]} : vector<8x96xbf16> to vector<2x96xbf16>
    %c8_71 = arith.constant 8 : index
    %c0_72 = arith.constant 0 : index
    %82 = vector.load %arg12[%c8_71, %c0_72] : memref<12x96xbf16, #tpu.memory_space<vmem>>, vector<2x96xbf16>
    tpu.vector_store %arg12[%c8_71, %c0_72], %81 {strides = array<i32>} : memref<12x96xbf16, #tpu.memory_space<vmem>>, vector<2x96xbf16>,
    %83 = vector.extract_strided_slice %76 {offsets = [6, 0], sizes = [2, 96], strides = [1, 1]} : vector<8x96xbf16> to vector<2x96xbf16>
    %c4_73 = arith.constant 4 : index
    %c0_74 = arith.constant 0 : index
    %84 = vector.load %arg12[%c4_73, %c0_74] : memref<12x96xbf16, #tpu.memory_space<vmem>>, vector<2x96xbf16>
    tpu.vector_store %arg12[%c4_73, %c0_74], %83 {strides = array<i32>} : memref<12x96xbf16, #tpu.memory_space<vmem>>, vector<2x96xbf16>,
    %c0_75 = arith.constant 0 : index
    %c0_76 = arith.constant 0 : index
    %85 = vector.load %arg12[%c0_75, %c0_76] : memref<12x96xbf16, #tpu.memory_space<vmem>>, vector<4x96xbf16>
    %c0_77 = arith.constant 0 : index
    %c0_78 = arith.constant 0 : index
    %c0_79 = arith.constant 0 : index
    %86 = vector.load %arg4[%c0_77, %c0_78, %c0_79] : memref<4x96x128xbf16, #tpu.memory_space<vmem>>, vector<1x96x128xbf16>
    %87 = vector.shape_cast %86 : vector<1x96x128xbf16> to vector<96x128xbf16>
    %cst_80 = arith.constant dense<0.000000e+00> : vector<4x128xf32>
    %88 = tpu.matmul %85, %87, %cst_80 {dimension_numbers = #tpu.dot_dimension_numbers<[1], [0], [0], [1], [0, 0, 1, 1], [], []>} : vector<4x96xbf16>, vector<96x128xbf16>, vector<4x128xf32> -> vector<4x128xf32>
    %c6_81 = arith.constant 6 : index
    %c0_82 = arith.constant 0 : index
    %89 = vector.load %arg12[%c6_81, %c0_82] : memref<12x96xbf16, #tpu.memory_space<vmem>>, vector<4x96xbf16>
    %c1_83 = arith.constant 1 : index
    %c0_84 = arith.constant 0 : index
    %c0_85 = arith.constant 0 : index
    %90 = vector.load %arg4[%c1_83, %c0_84, %c0_85] : memref<4x96x128xbf16, #tpu.memory_space<vmem>>, vector<1x96x128xbf16>
    %91 = vector.shape_cast %90 : vector<1x96x128xbf16> to vector<96x128xbf16>
    %cst_86 = arith.constant dense<0.000000e+00> : vector<4x128xf32>
    %92 = tpu.matmul %89, %91, %cst_86 {dimension_numbers = #tpu.dot_dimension_numbers<[1], [0], [0], [1], [0, 0, 1, 1], [], []>} : vector<4x96xbf16>, vector<96x128xbf16>, vector<4x128xf32> -> vector<4x128xf32>
    %93 = arith.addf %88, %92 : vector<4x128xf32>
    %c2_87 = arith.constant 2 : index
    %c0_88 = arith.constant 0 : index
    %94 = vector.load %arg12[%c2_87, %c0_88] : memref<12x96xbf16, #tpu.memory_space<vmem>>, vector<4x96xbf16>
    %c2_89 = arith.constant 2 : index
    %c0_90 = arith.constant 0 : index
    %c0_91 = arith.constant 0 : index
    %95 = vector.load %arg4[%c2_89, %c0_90, %c0_91] : memref<4x96x128xbf16, #tpu.memory_space<vmem>>, vector<1x96x128xbf16>
    %96 = vector.shape_cast %95 : vector<1x96x128xbf16> to vector<96x128xbf16>
    %cst_92 = arith.constant dense<0.000000e+00> : vector<4x128xf32>
    %97 = tpu.matmul %94, %96, %cst_92 {dimension_numbers = #tpu.dot_dimension_numbers<[1], [0], [0], [1], [0, 0, 1, 1], [], []>} : vector<4x96xbf16>, vector<96x128xbf16>, vector<4x128xf32> -> vector<4x128xf32>
    %98 = arith.addf %93, %97 : vector<4x128xf32>
    %c8_93 = arith.constant 8 : index
    %c0_94 = arith.constant 0 : index
    %99 = vector.load %arg12[%c8_93, %c0_94] : memref<12x96xbf16, #tpu.memory_space<vmem>>, vector<4x96xbf16>
    %c3_95 = arith.constant 3 : index
    %c0_96 = arith.constant 0 : index
    %c0_97 = arith.constant 0 : index
    %100 = vector.load %arg4[%c3_95, %c0_96, %c0_97] : memref<4x96x128xbf16, #tpu.memory_space<vmem>>, vector<1x96x128xbf16>
    %101 = vector.shape_cast %100 : vector<1x96x128xbf16> to vector<96x128xbf16>
    %cst_98 = arith.constant dense<0.000000e+00> : vector<4x128xf32>
    %102 = tpu.matmul %99, %101, %cst_98 {dimension_numbers = #tpu.dot_dimension_numbers<[1], [0], [0], [1], [0, 0, 1, 1], [], []>} : vector<4x96xbf16>, vector<96x128xbf16>, vector<4x128xf32> -> vector<4x128xf32>
    %103 = arith.addf %98, %102 : vector<4x128xf32>
    %c0_99 = arith.constant 0 : index
    %c0_100 = arith.constant 0 : index
    %104 = vector.load %arg8[%c0_99, %c0_100] : memref<1x128xf32, #tpu.memory_space<vmem>>, vector<1x128xf32>
    %105 = vector.broadcast %104 : vector<1x128xf32> to vector<4x128xf32>
    %106 = arith.addf %103, %105 : vector<4x128xf32>
    %cst_101 = arith.constant 0.000000e+00 : f32
    %107 = vector.broadcast %cst_101 : f32 to vector<4x128xf32>
    %108 = arith.maximumf %106, %107 : vector<4x128xf32>
    %109 = arith.truncf %108 : vector<4x128xf32> to vector<4x128xbf16>
    %110 = vector.extract_strided_slice %109 {offsets = [0, 0], sizes = [2, 128], strides = [1, 1]} : vector<4x128xbf16> to vector<2x128xbf16>
    %c4_102 = arith.constant 4 : index
    %c0_103 = arith.constant 0 : index
    %111 = vector.load %arg13[%c4_102, %c0_103] : memref<8x128xbf16, #tpu.memory_space<vmem>>, vector<2x128xbf16>
    tpu.vector_store %arg13[%c4_102, %c0_103], %110 {strides = array<i32>} : memref<8x128xbf16, #tpu.memory_space<vmem>>, vector<2x128xbf16>,
    %112 = vector.extract_strided_slice %109 {offsets = [2, 0], sizes = [2, 128], strides = [1, 1]} : vector<4x128xbf16> to vector<2x128xbf16>
    %c2_104 = arith.constant 2 : index
    %c0_105 = arith.constant 0 : index
    %113 = vector.load %arg13[%c2_104, %c0_105] : memref<8x128xbf16, #tpu.memory_space<vmem>>, vector<2x128xbf16>
    tpu.vector_store %arg13[%c2_104, %c0_105], %112 {strides = array<i32>} : memref<8x128xbf16, #tpu.memory_space<vmem>>, vector<2x128xbf16>,
    %c0_106 = arith.constant 0 : index
    %c0_107 = arith.constant 0 : index
    %114 = vector.load %arg13[%c0_106, %c0_107] : memref<8x128xbf16, #tpu.memory_space<vmem>>, vector<2x128xbf16>
    %c0_108 = arith.constant 0 : index
    %c0_109 = arith.constant 0 : index
    %c0_110 = arith.constant 0 : index
    %115 = vector.load %arg5[%c0_108, %c0_109, %c0_110] : memref<4x128x64xbf16, #tpu.memory_space<vmem>>, vector<1x128x64xbf16>
    %116 = vector.shape_cast %115 : vector<1x128x64xbf16> to vector<128x64xbf16>
    %cst_111 = arith.constant dense<0.000000e+00> : vector<2x64xf32>
    %117 = tpu.matmul %114, %116, %cst_111 {dimension_numbers = #tpu.dot_dimension_numbers<[1], [0], [0], [1], [0, 0, 1, 1], [], []>} : vector<2x128xbf16>, vector<128x64xbf16>, vector<2x64xf32> -> vector<2x64xf32>
    %c4_112 = arith.constant 4 : index
    %c0_113 = arith.constant 0 : index
    %118 = vector.load %arg13[%c4_112, %c0_113] : memref<8x128xbf16, #tpu.memory_space<vmem>>, vector<2x128xbf16>
    %c1_114 = arith.constant 1 : index
    %c0_115 = arith.constant 0 : index
    %c0_116 = arith.constant 0 : index
    %119 = vector.load %arg5[%c1_114, %c0_115, %c0_116] : memref<4x128x64xbf16, #tpu.memory_space<vmem>>, vector<1x128x64xbf16>
    %120 = vector.shape_cast %119 : vector<1x128x64xbf16> to vector<128x64xbf16>
    %cst_117 = arith.constant dense<0.000000e+00> : vector<2x64xf32>
    %121 = tpu.matmul %118, %120, %cst_117 {dimension_numbers = #tpu.dot_dimension_numbers<[1], [0], [0], [1], [0, 0, 1, 1], [], []>} : vector<2x128xbf16>, vector<128x64xbf16>, vector<2x64xf32> -> vector<2x64xf32>
    %122 = arith.addf %117, %121 : vector<2x64xf32>
    %c2_118 = arith.constant 2 : index
    %c0_119 = arith.constant 0 : index
    %123 = vector.load %arg13[%c2_118, %c0_119] : memref<8x128xbf16, #tpu.memory_space<vmem>>, vector<2x128xbf16>
    %c2_120 = arith.constant 2 : index
    %c0_121 = arith.constant 0 : index
    %c0_122 = arith.constant 0 : index
    %124 = vector.load %arg5[%c2_120, %c0_121, %c0_122] : memref<4x128x64xbf16, #tpu.memory_space<vmem>>, vector<1x128x64xbf16>
    %125 = vector.shape_cast %124 : vector<1x128x64xbf16> to vector<128x64xbf16>
    %cst_123 = arith.constant dense<0.000000e+00> : vector<2x64xf32>
    %126 = tpu.matmul %123, %125, %cst_123 {dimension_numbers = #tpu.dot_dimension_numbers<[1], [0], [0], [1], [0, 0, 1, 1], [], []>} : vector<2x128xbf16>, vector<128x64xbf16>, vector<2x64xf32> -> vector<2x64xf32>
    %127 = arith.addf %122, %126 : vector<2x64xf32>
    %c6_124 = arith.constant 6 : index
    %c0_125 = arith.constant 0 : index
    %128 = vector.load %arg13[%c6_124, %c0_125] : memref<8x128xbf16, #tpu.memory_space<vmem>>, vector<2x128xbf16>
    %c3_126 = arith.constant 3 : index
    %c0_127 = arith.constant 0 : index
    %c0_128 = arith.constant 0 : index
    %129 = vector.load %arg5[%c3_126, %c0_127, %c0_128] : memref<4x128x64xbf16, #tpu.memory_space<vmem>>, vector<1x128x64xbf16>
    %130 = vector.shape_cast %129 : vector<1x128x64xbf16> to vector<128x64xbf16>
    %cst_129 = arith.constant dense<0.000000e+00> : vector<2x64xf32>
    %131 = tpu.matmul %128, %130, %cst_129 {dimension_numbers = #tpu.dot_dimension_numbers<[1], [0], [0], [1], [0, 0, 1, 1], [], []>} : vector<2x128xbf16>, vector<128x64xbf16>, vector<2x64xf32> -> vector<2x64xf32>
    %132 = arith.addf %127, %131 : vector<2x64xf32>
    %c0_130 = arith.constant 0 : index
    %c0_131 = arith.constant 0 : index
    %133 = vector.load %arg9[%c0_130, %c0_131] : memref<1x64xf32, #tpu.memory_space<vmem>>, vector<1x64xf32>
    %134 = vector.broadcast %133 : vector<1x64xf32> to vector<2x64xf32>
    %135 = arith.addf %132, %134 : vector<2x64xf32>
    %cst_132 = arith.constant 0.000000e+00 : f32
    %136 = vector.broadcast %cst_132 : f32 to vector<2x64xf32>
    %137 = arith.maximumf %135, %136 : vector<2x64xf32>
    %c0_133 = arith.constant 0 : index
    %c0_134 = arith.constant 0 : index
    %c0_135 = arith.constant 0 : index
    %138 = vector.load %arg10[%c0_133, %c0_134, %c0_135] : memref<1x2x64xf32, #tpu.memory_space<vmem>>, vector<1x2x64xf32>
    %139 = vector.shape_cast %138 : vector<1x2x64xf32> to vector<2x64xf32>
    %140 = vector.shape_cast %137 : vector<2x64xf32> to vector<1x2x64xf32>
    tpu.vector_store %arg10[%c0_133, %c0_134, %c0_135], %140 {strides = array<i32>} : memref<1x2x64xf32, #tpu.memory_space<vmem>>, vector<1x2x64xf32>,
    return
  }
  func.func @transform_0(%arg0: i32) -> (i32, i32, i32) {
    %c0_i32 = arith.constant 0 : i32
    %c0_i32_0 = arith.constant 0 : i32
    %c0_i32_1 = arith.constant 0 : i32
    return %arg0, %c0_i32, %c0_i32_0 : i32, i32, i32
  }
  func.func @transform_1(%arg0: i32) -> (i32, i32, i32) {
    %c0_i32 = arith.constant 0 : i32
    %c0_i32_0 = arith.constant 0 : i32
    %c0_i32_1 = arith.constant 0 : i32
    %c0_i32_2 = arith.constant 0 : i32
    return %c0_i32, %c0_i32_0, %c0_i32_1 : i32, i32, i32
  }
  func.func @transform_2(%arg0: i32) -> (i32, i32, i32) {
    %c0_i32 = arith.constant 0 : i32
    %c0_i32_0 = arith.constant 0 : i32
    %c0_i32_1 = arith.constant 0 : i32
    %c0_i32_2 = arith.constant 0 : i32
    return %c0_i32, %c0_i32_0, %c0_i32_1 : i32, i32, i32
  }
  func.func @transform_3(%arg0: i32) -> (i32, i32, i32) {
    %c0_i32 = arith.constant 0 : i32
    %c0_i32_0 = arith.constant 0 : i32
    %c0_i32_1 = arith.constant 0 : i32
    %c0_i32_2 = arith.constant 0 : i32
    return %c0_i32, %c0_i32_0, %c0_i32_1 : i32, i32, i32
  }
  func.func @transform_4(%arg0: i32) -> (i32, i32, i32) {
    %c0_i32 = arith.constant 0 : i32
    %c0_i32_0 = arith.constant 0 : i32
    %c0_i32_1 = arith.constant 0 : i32
    %c0_i32_2 = arith.constant 0 : i32
    return %c0_i32, %c0_i32_0, %c0_i32_1 : i32, i32, i32
  }
  func.func @transform_5(%arg0: i32) -> (i32, i32) {
    %c0_i32 = arith.constant 0 : i32
    %c0_i32_0 = arith.constant 0 : i32
    %c0_i32_1 = arith.constant 0 : i32
    return %c0_i32, %c0_i32_0 : i32, i32
  }
  func.func @transform_6(%arg0: i32) -> (i32, i32) {
    %c0_i32 = arith.constant 0 : i32
    %c0_i32_0 = arith.constant 0 : i32
    %c0_i32_1 = arith.constant 0 : i32
    return %c0_i32, %c0_i32_0 : i32, i32
  }
  func.func @transform_7(%arg0: i32) -> (i32, i32) {
    %c0_i32 = arith.constant 0 : i32
    %c0_i32_0 = arith.constant 0 : i32
    %c0_i32_1 = arith.constant 0 : i32
    return %c0_i32, %c0_i32_0 : i32, i32
  }
  func.func @transform_8(%arg0: i32) -> (i32, i32) {
    %c0_i32 = arith.constant 0 : i32
    %c0_i32_0 = arith.constant 0 : i32
    %c0_i32_1 = arith.constant 0 : i32
    return %c0_i32, %c0_i32_0 : i32, i32
  }
  func.func @transform_9(%arg0: i32) -> (i32, i32, i32) {
    %c0_i32 = arith.constant 0 : i32
    %c0_i32_0 = arith.constant 0 : i32
    %c0_i32_1 = arith.constant 0 : i32
    return %arg0, %c0_i32, %c0_i32_0 : i32, i32, i32
  }
}

</mosaic_0001>

<bundles_post_ra>
// kernel: forward.1
= control target key start
LH: loop header
LB: loop body
LE: loop exit
PB: predicated region body
PF: predicated region fallthrough
CT: control target
= control target key end

     0   :  { %14 = vsyncpa [#allocation6], 0  ;;  %s3313_s0 = inlined_call_operand.vmem [shape: bf16[2,36,18], index: 0, kind: input, shape index: {}]   ;;  %s3314_s1 = inlined_call_operand.vmem [shape: bf16[4,18,80], index: 1, kind: input, shape index: {}]   ;;  %s3315_s2 = inlined_call_operand.vmem [shape: bf16[4,80,96], index: 2, kind: input, shape index: {}]   ;;  %s3316_s3 = inlined_call_operand.vmem [shape: bf16[4,96,128], index: 3, kind: input, shape index: {}]   ;;  %s3317_s4 = inlined_call_operand.vmem [shape: bf16[4,128,64], index: 4, kind: input, shape index: {}]   ;;  %s3318_s5 = inlined_call_operand.vmem [shape: f32[1,80], index: 5, kind: input, shape index: {}]   ;;  %s3319_s6 = inlined_call_operand.vmem [shape: f32[1,96], index: 6, kind: input, shape index: {}]   ;;  %s3320_s7 = inlined_call_operand.vmem [shape: f32[1,128], index: 7, kind: input, shape index: {}]   ;;  %s3321_s8 = inlined_call_operand.vmem [shape: f32[1,64], index: 8, kind: input, shape index: {}]   ;;  %s3322_s9 = inlined_call_operand.hbm [shape: f32[2,2,64], index: 9, kind: output, shape index: {}]  }
   0x1   :  { %16 = vsyncpa [#allocation6 + $0x1], 0  ;;  %s2816_s30 = smov 0   ;;  %s2818_s10 = smov 0  }
   0x2   :  { %s2820_s11 = smov 0   ;;  %s2822_s12 = smov 0  }
   0x3 LB: > { %s2837_s7 = sadd.s32 4294967295, %s2760_s12   ;;  %s1973_s13 = sadd.s32 4294967294, %s2760_s12   ;;  %s2760_s12 = sphi %s2822_s12, %s3328_s12   ;;  %s2756_s11 = sphi %s2820_s11, %s3327_s11   ;;  %s2752_s10 = sphi %s2818_s10, %s3326_s10   ;;  %s2748_s30 = sphi %s2816_s30, %s3325_s30  }
   0x4   : > { %s2841_s14 = sadd.s32 1, %s2760_s12   ;;  %s223_s15 = sadd.s32 1, %s2756_s11 }
   0x5   : > { %s220_s16 = ssub.s32 %s2760_s12, %s2841_s14  ;;  %p233_p0 = scmp.ne.s32.totalorder %s2756_s11, %s2752_s10 }
   0x6   : > { %p221_p1 = scmp.eq.s32.totalorder %s220_s16, 0  ;;  %p234_p2 = scmp.eq.s32.totalorder %s2837_s7, 1 }
   0x7   : > { %p239_p3 = scmp.ne.s32.totalorder %s2752_s10, %s2748_s30  ;;  %p240_p4 = scmp.eq.s32.totalorder %s1973_s13, 1 }
   0x8   : > { %s2852_s17 = scalar_select %p221_p1, %s2756_s11, %s223_s15  }
   0x9   : > { %p2854_p5 = por %p234_p2, %p233_p0  ;;  %p2858_p6 = por %p240_p4, %p239_p3 }
   0xa   : > { %p1976_p7 = scmp.ge.s32.totalorder %s2760_s12, 1  ;;  %p290_p8 = scmp.lt.s32.totalorder %s2760_s12, 3 }
   0xc   : > { %p291_p9 = pnand %p1976_p7, %p290_p8 }
   0xd   : > { %p326_p10 = scmp.lt.s32.totalorder (!%p291_p9), %s2837_s7, 1  ;;  %s323_s28 = sand.u32 (!%p291_p9), 1, %s2752_s10  }
   0xe   : > { %294 = sbr.rel (%p291_p9) target bundleno = 799 (0x31f), region = 56  ;;  %s1977_s29 = sshll.u32 (!%p291_p9), %s323_s28, 1 }
   0xf   : > { %s2222_s16 = sshll.u32 (!%p291_p9), %s2837_s7, 5  ;;  %s1901_s25 = scalar_lea.sflag (!%p291_p9), [#allocation6], %s323_s28 }
  0x10   : > { %s1912_s24 = scalar_lea.hbm (!%p291_p9), %s3322_s9, %s2222_s16  ;;  %s2765_s27 = smov (!%p291_p9), [#allocation5]  }
  0x13   : > { %vm379_vm0 = vcmask 1040384   ;;  %v2762_v0 = vmov 0.0   ;;  %v2604_v1 = vld [vmem:[%s3314_s1 + $0x8] ss:$0 sps:$4 sm:$0x11]   ;;  %vm2763_vm1 = vmmov 0  }
  0x14   : > { %2337 = vmatprep.subr.bf16.mxu1 %v2762_v0  ;;  %2329 = vmatprep.subr.bf16.mxu0 %v2762_v0  ;;  %v2605_v2 = vld [vmem:[%s3314_s1 + $0x14] ss:$0 sps:$4 sm:$0x11]   ;;  %v442_v3 = vsel %vm379_vm0, %v2604_v1, 0  ;;  %v2606_v5 = vld [vmem:[%s3314_s1] sm:$0xff]   ;;  %v2607_v6 = vld [vmem:[%s3314_s1 + $0xc] sm:$0xff]  }
  0x15   : > { %v381_v4 = vsel %vm379_vm0, %v2605_v2, 0  ;;  %2341 = vmatprep.mubr.msk.bf16.mxu1 %vm2763_vm1, %v2762_v0  ;;  %2333 = vmatprep.mubr.msk.bf16.mxu0 %vm2763_vm1, %v2762_v0  ;;  %v2609_v7 = vld [vmem:[%s3314_s1 + $0x2c] ss:$0 sps:$4 sm:$0x11]   ;;  %s327_s13 = scalar_select %p326_p10, %s2837_s7, 1  ;;  %vm375_vm2 = vcmask 146432  }
  0x16   : > { %2338 = vmatpush3.bf16.msra.mxu1 %v442_v3  ;;  %2330 = vmatpush3.bf16.msra.mxu0 %v381_v4  ;;  %v2612_v8 = vld [vmem:[%s3314_s1 + $0x20] ss:$0 sps:$4 sm:$0x11]   ;;  %v572_v9 = vsel %vm379_vm0, %v2609_v7, 0  ;;  %vm362_vm3 = vcmask 1046528   ;;  %v2613_v14 = vld [vmem:[%s3314_s1 + $0x24] sm:$0xff]  }
  0x17   : > { %2339 = vmatprep.subr.bf16.mxu1 %v2762_v0  ;;  %2331 = vmatprep.subr.bf16.mxu0 %v2762_v0  ;;  %s2561_s20 = smul.u32 20, %s327_s13  ;;  %v506_v11 = vsel %vm379_vm0, %v2612_v8, 0  ;;  %vm555_vm4 = vcmask 1045504   ;;  %v2614_v25 = vld [vmem:[%s3314_s1 + $0x18] sm:$0xff]   ;;  %vm334_vm5 = vcmask 648193   ;;  %v2764_v28 = vmov 0  }
  0x18   : > { %335 = vst.msk [vmem:[#allocation2 + $0x8] sm:$0x2] %vm334_vm5, %v2764_v28  ;;  %340 = vst [vmem:[#allocation4] sm:$0x1] %v2764_v28  ;;  %v2616_v29 = vld [vmem:[%s3315_s2 + $0x20] sm:$0xff]   ;;  %v2617_v30 = vld [vmem:[%s3315_s2 + $0x18] sm:$0xff]  }
  0x19   : > { %s330_s23 = scalar_lea.vmem %s3313_s0, %s2561_s20  ;;  %v2618_v31 = vld [vmem:[%s3315_s2 + $0x48] sm:$0xff]   ;;  %v2619_v32 = vld [vmem:[%s3315_s2 + $0x10] sm:$0xff]   ;;  %v2620_v33 = vld [vmem:[%s3315_s2 + $0x40] sm:$0xff]   ;;  %vm332_vm6 = vcmask 647168   ;;  %vm636_vm7 = vcmask 649218   ;;  %vm646_vm8 = vcmask 650243  }
  0x1a   : > { %2340 = vmatpush3.bf16.msra.mxu1 %v2606_v5  ;;  %2332 = vmatpush3.bf16.msra.mxu0 %v2607_v6  ;;  %v2608_v10 = vld [vmem:[%s330_s23] sm:$0xff]   ;;  %v344_v12 = vld [vmem:[%s330_s23 + $0x8] sm:$0xf]  ;;  %v345_v13 = vld [vmem:[%s330_s23 + $0xc] sm:$0xf]  ;;  %vm718_vm9 = vcmask 654336  }
  0x1b   : > { %2353 = vmatprep.subr.bf16.mxu1 %v2762_v0  ;;  %2345 = vmatprep.subr.bf16.mxu0 %v2762_v0  ;;  %v1982_v15 = vcombine.low %v344_v12, %v345_v13  ;;  %v2611_v16 = vld [vmem:[%s330_s23 + $0x10] ss:$0 sps:$4 sm:$0x33]   ;;  %v1994_v17 = vcombine.low %v344_v12, %v344_v12  ;;  %v490_v22 = vrot.slane %v2608_v10, 1  ;;  %333 = vst.msk [vmem:[#allocation2] sm:$0x1] %vm332_vm6, %v2764_v28 }
  0x1c   : > { %v364_v19 = vrot.slane %v2611_v16, 1  ;;  %v557_v21 = vrot.slane %v2611_v16, 2  ;;  %v2621_v34 = vld [vmem:[%s3315_s2 + $0x8] sm:$0xff]   ;;  %v2622_v35 = vld [vmem:[%s3315_s2 + $0x38] sm:$0xff]   ;;  %v2623_v36 = vld [vmem:[%s3315_s2] sm:$0xff]   ;;  %vm336_vm10 = vcmask 778240  }
  0x1d   : > { %2342 = vmatmul.mubr.msk.bf16.vlgmr.msra.gmra.mxu1 %vm375_vm2, %v2608_v10  ;;  %v363_v18 = vrot.slane %v1982_v15, 1  ;;  %v556_v20 = vrot.slane %v1982_v15, 2  ;;  %v491_v23 = vrot.slane %v1994_v17, 1  ;;  %v2624_v37 = vld [vmem:[%s3315_s2 + $0x30] sm:$0xff]   ;;  %v2626_v38 = vld [vmem:[%s3315_s2 + $0x28] sm:$0xff]   ;;  %v2625_v12 = vld [vmem:[%s3315_s2 + $0x98] sm:$0xff]  }
  0x1e   : > { %2354 = vmatpush3.bf16.msra.mxu1 %v572_v9  ;;  %2357 = vmatprep.mubr.msk.bf16.mxu1 %vm2763_vm1, %v2762_v0  ;;  %v2004_v54 = vld [vmem:[%s3318_s5] ss:$0 sm:$0xff]  ;;  %v2629_v16 = vld [vmem:[%s3315_s2 + $0x70] sm:$0xff]   ;;  %vm338_vm11 = vcmask 779265   ;;  %337 = vst.msk [vmem:[#allocation3] sm:$0x1] %vm336_vm10, %v2764_v28 }
  0x1f   : > { %2355 = vmatprep.subr.bf16.mxu1 %v2762_v0  ;;  %v365_v24 = vsel %vm362_vm3, %v363_v18, %v364_v19  ;;  %v558_v26 = vsel %vm555_vm4, %v556_v20, %v557_v21  ;;  %v492_v27 = vsel %vm362_vm3, %v490_v22, %v491_v23  ;;  %v2630_v18 = vld [vmem:[%s3315_s2 + $0x88] sm:$0xff]   ;;  %v2632_v20 = vld [vmem:[%s3315_s2 + $0x80] sm:$0xff]   ;;  %v2634_v22 = vld [vmem:[%s3315_s2 + $0x78] sm:$0xff]   ;;  %339 = vst.msk [vmem:[#allocation3 + $0x4] sm:$0x2] %vm338_vm11, %v2764_v28  ;;  %vm1036_vm12 = vcmask 781315  }
  0x20   : > { %2334 = vmatmul.mubr.msk.bf16.vlgmr.msra.gmra.mxu0 %vm375_vm2, %v365_v24  ;;  %v2631_v19 = vld [vmem:[%s3315_s2 + $0x68] sm:$0xff]   ;;  %v2633_v21 = vld [vmem:[%s3315_s2 + $0x60] sm:$0xff]   ;;  %v2635_v23 = vld [vmem:[%s3315_s2 + $0x58] sm:$0xff]   ;;  %vm1117_vm13 = vcmask 785408   ;;  %s325_s20 = scalar_lea.vmem [#allocation5], %s1977_s29  ;;  %vm1898_vm14 = vcmask 517120  }
  0x21   : > { %2346 = vmatpush3.bf16.msra.mxu0 %v506_v11  ;;  %2349 = vmatprep.mubr.msk.bf16.mxu0 %vm2763_vm1, %v2762_v0  ;;  %v2644_v28 = vld [vmem:[%s3316_s3 + $0x10] sm:$0xff]   ;;  %s1914_s21 = sshll.u32 %s325_s20, 4  ;;  %s2704_s7 = sshll.u32 %s2765_s27, 4  ;;  %s1915_s21 = int_to_ptr.vmem [resolvable:$true] %s1914_s21  ;;  %s2705_s7 = int_to_ptr.vmem [resolvable:$false] %s2704_s7 }
  0x22   : > { %2356 = vmatpush3.bf16.msra.mxu1 %v2613_v14  ;;  %2347 = vmatprep.subr.bf16.mxu0 %v2762_v0  ;;  %v2627_v14 = vld [vmem:[%s3315_s2 + $0x90] sm:$0xff]   ;;  %s2700_s26 = scalar_lea.vmem %s1915_s21, 32  ;;  %s2706_s29 = scalar_lea.vmem %s2705_s7, 64 }
  0x23   : > { %2375 = vmatprep.subr.bf16.mxu1 %v2762_v0  ;;  %p2701_p11 = scmp.ne.s32.totalorder %s1915_s21, %s2700_s26  ;;  %p2707_p0 = scmp.lt.s32.totalorder %s1915_s21, %s2705_s7 }
  0x24   : > { %p2708_p1 = scmp.lt.s32.totalorder %s2706_s29, %s2700_s26 }
  0x25   : > { %2358 = vmatmul.mubr.msk.bf16.vlgmr.msra.gmra.mxu1 %vm375_vm2, %v558_v26  ;;  %2348 = vmatpush3.bf16.msra.mxu0 %v2614_v25  ;;  %v2637_v26 = vld [vmem:[%s3315_s2 + $0x50] sm:$0xff]   ;;  %p2702_p12 = pnand %p2701_p11, %p2854_p5 }
  0x26   : > { %2385 = vmatprep.mubr.msk.bf16.mxu1 %vm2763_vm1, %v2762_v0  ;;  %2361 = vmatprep.subr.bf16.mxu0 %v2762_v0  ;;  %p2709_p2 = por %p2708_p1, %p2707_p0 }
  0x27   : > { %2376 = vmatpush3.bf16.msra.mxu1 %v2616_v29  ;;  %p2703_p13 = pneg %p2702_p12 }
  0x28   : > { %2350 = vmatmul.mubr.msk.bf16.vlgmr.msra.gmra.mxu0 %vm375_vm2, %v492_v27  ;;  %2377 = vmatprep.subr.bf16.mxu1 %v2762_v0 }
  0x29   : > { %2371 = vmatprep.mubr.msk.bf16.mxu0 %vm2763_vm1, %v2762_v0  ;;  %2362 = vmatpush3.bf16.msra.mxu0 %v2618_v31  ;;  %v2640_v31 = vld [vmem:[%s3316_s3 + $0x20] sm:$0xff]   ;;  %p2710_p3 = pnand %p2709_p2, %p2703_p13 }
  0x2a   : > { %2363 = vmatprep.subr.bf16.mxu0 %v2762_v0 }
  0x2b   : > { %2378 = vmatpush3.bf16.msra.mxu1 %v2617_v30  ;;  %v2639_v30 = vld [vmem:[%s3316_s3 + $0x28] sm:$0xff]  }
  0x2c   : > { %2379 = vmatprep.subr.bf16.mxu1 %v2762_v0 }
  0x2d   : > { %2364 = vmatpush3.bf16.msra.mxu0 %v2620_v33  ;;  %v2642_v33 = vld [vmem:[%s3316_s3 + $0x18] sm:$0xff]  }
  0x2e   : > { %2365 = vmatprep.subr.bf16.mxu0 %v2762_v0 }
  0x2f   : > { %2380 = vmatpush3.bf16.msra.mxu1 %v2619_v32  ;;  %v2641_v32 = vld [vmem:[%s3316_s3 + $0x58] sm:$0xff]  }
  0x30   : > { %2381 = vmatprep.subr.bf16.mxu1 %v2762_v0 }
  0x31   : > { %2366 = vmatpush3.bf16.msra.mxu0 %v2622_v35  ;;  %v2645_v35 = vld [vmem:[%s3316_s3 + $0x48] sm:$0xff]  }
  0x32   : > { %2367 = vmatprep.subr.bf16.mxu0 %v2762_v0 }
  0x33   : > { %2382 = vmatpush3.bf16.msra.mxu1 %v2621_v34  ;;  %v2643_v34 = vld [vmem:[%s3316_s3 + $0x50] sm:$0xff]  }
  0x34   : > { %2383 = vmatprep.subr.bf16.mxu1 %v2762_v0 }
  0x35   : > { %2368 = vmatpush3.bf16.msra.mxu0 %v2624_v37  ;;  %v2647_v37 = vld [vmem:[%s3316_s3 + $0x40] sm:$0xff]  }
  0x36   : > { %2369 = vmatprep.subr.bf16.mxu0 %v2762_v0 }
  0x37   : > { %2384 = vmatpush3.bf16.msra.mxu1 %v2623_v36  ;;  %v2646_v36 = vld [vmem:[%s3316_s3 + $0x8] sm:$0xff]  }
  0x38   : > { %2403 = vmatprep.subr.bf16.mxu1 %v2762_v0 }
  0x39   : > { %2370 = vmatpush3.bf16.msra.mxu0 %v2626_v38  ;;  %v2648_v38 = vld [vmem:[%s3316_s3] sm:$0xff]  }
  0x3a   : > { %2389 = vmatprep.subr.bf16.mxu0 %v2762_v0 }
  0xdd   : > { %v478_v39 = vpop.f32.mrf.mxu1 }
  0xdf   : > { %v2343_v40 = vpop.f32.mrf.mxu1 }
  0xe0   : > { %v417_v42 = vpop.f32.mrf.mxu0  ;;  %v2651_v40 = vld [vmem:[%s3316_s3 + $0x30] sm:$0xff]  }
  0xe1   : > { %v481_v41 = vpop.f32.mrf.mxu1  ;;  %v479_v49 = vadd.f32 %v478_v39, %v417_v42  ;;  %v2649_v39 = vld [vmem:[%s3316_s3 + $0x38] sm:$0xff]  }
  0xe2   : > { %v2335_v44 = vpop.f32.mrf.mxu0 }
  0xe3   : > { %v2344_v43 = vpop.f32.mrf.mxu1 }
  0xe4   : > { %v420_v46 = vpop.f32.mrf.mxu0 }
  0xe5   : > { %v608_v45 = vpop.f32.mrf.mxu1  ;;  %v482_v56 = vadd.f32 %v481_v41, %v420_v46 }
  0xe6   : > { %v2336_v48 = vpop.f32.mrf.mxu0 }
  0xe7   : > { %v2359_v47 = vpop.f32.mrf.mxu1 }
  0xe8   : > { %v542_v51 = vpop.f32.mrf.mxu0 }
  0xe9   : > { %v611_v50 = vpop.f32.mrf.mxu1  ;;  %v549_v52 = vadd.f32 %v542_v51, %v479_v49 }
  0xea   : > { %v2351_v55 = vpop.f32.mrf.mxu0 }
  0xeb   : > { %v2360_v53 = vpop.f32.mrf.mxu1  ;;  %v615_v57 = vadd.f32 %v608_v45, %v549_v52 }
  0xec   : > { %v545_v58 = vpop.f32.mrf.mxu0 }
  0xed   : > { %v624_v59 = vadd.f32 %v2004_v54, %v615_v57  ;;  %v550_v60 = vadd.f32 %v545_v58, %v482_v56  ;;  %v2066_v56 = vld [vmem:[%s3319_s6] ss:$0 sm:$0xff] }
  0xee   : > { %v2352_v61 = vpop.f32.mrf.mxu0 }
  0xef   : > { %v626_v62 = vmax.f32 %v624_v59, 0.0  ;;  %v616_v63 = vadd.f32 %v611_v50, %v550_v60 }
  0xf1   : > { %v2225_v1 = vpack.c.bf16 %v626_v62, %v626_v62  ;;  %v625_v2 = vadd.f32 %v2004_v54, %v616_v63 }
  0xf3   : > { %v632_v3 = vrot.slane %v2225_v1, 7  ;;  %v2006_v4 = vrot.slane %v2225_v1, 9  ;;  %v627_v5 = vmax.f32 %v625_v2, 0.0 }
  0xf5   : > { %634 = vst.msk [vmem:[#allocation2 + $0x4] sm:$0x2] %vm334_vm5, %v632_v3  ;;  %v628_v6 = vpack.c.bf16 %v627_v5, %v626_v62  ;;  %v2226_v7 = vpack.c.bf16 %v627_v5, %v627_v5  ;;  %v2650_v3 = vld [vmem:[%s3316_s3 + $0xb8] sm:$0xff]   ;;  %v2652_v5 = vld [vmem:[%s3316_s3 + $0xb0] sm:$0xff]  }
  0xf6   : > { %641 = vst.msk [vmem:[#allocation2] sm:$0x4] %vm636_vm7, %v2006_v4 }
  0xf7   : > { %635 = vst.msk [vmem:[#allocation2] sm:$0x2] %vm334_vm5, %v628_v6  ;;  %v644_v8 = vrot.slane %v2226_v7, 5  ;;  %v648_v9 = vrot.slane %v2226_v7, 6  ;;  %v2008_v10 = vrot.slane %v2226_v7, 11  ;;  %v2654_v7 = vld [vmem:[%s3316_s3 + $0x88] sm:$0xff]  }
  0xf8   : > { %637 = vst.msk [vmem:[#allocation2 + $0x4] sm:$0x4] %vm636_vm7, %v628_v6 }
  0xf9   : > { %647 = vst.msk [vmem:[#allocation2 + $0x4] sm:$0x8] %vm646_vm8, %v644_v8  ;;  %650 = vst.msk [vmem:[#allocation2] sm:$0x8] %vm646_vm8, %v648_v9  ;;  %v651_v11 = vrot.slane %v648_v9, 4  ;;  %v2655_v9 = vld [vmem:[%s3316_s3 + $0xa8] sm:$0xff]  }
  0xfa   : > { %657 = vst.msk [vmem:[#allocation2 + $0x4] sm:$0x1] %vm332_vm6, %v2008_v10  ;;  %v2656_v10 = vld [vmem:[%s3316_s3 + $0x80] sm:$0xff]  }
  0xfb   : > { %653 = vst.msk [vmem:[#allocation2 + $0x8] sm:$0x1] %vm332_vm6, %v651_v11  ;;  %v2657_v11 = vld [vmem:[%s3316_s3 + $0xa0] sm:$0xff]  }
 0x100   : > { %v658_v13 = vld [vmem:[#allocation2] sm:$0xf] }
 0x101   : > { %2386 = vmatmul.mubr.msk.bf16.vlgmr.msra.gmra.mxu1 %vm718_vm9, %v658_v13  ;;  %v2638_v27 = vld [vmem:[#allocation2] sm:$0x1e]   ;;  %v2659_v13 = vld [vmem:[%s3316_s3 + $0x98] sm:$0xff]  }
 0x102   : > { %2404 = vmatpush3.bf16.msra.mxu1 %v2625_v12  ;;  %v2628_v15 = vld [vmem:[#allocation2 + $0x4] sm:$0x1e]   ;;  %2413 = vmatprep.mubr.msk.bf16.mxu1 %vm2763_vm1, %v2762_v0  ;;  %v853_v29 = vrot.slane %v2638_v27, 1  ;;  %v2658_v12 = vld [vmem:[%s3316_s3 + $0x78] sm:$0xff]  }
 0x103   : > { %2405 = vmatprep.subr.bf16.mxu1 %v2762_v0  ;;  %v687_v17 = vrot.slane %v2628_v15, 1  ;;  %v2636_v24 = vld [vmem:[#allocation2 + $0x4] sm:$0x3c]   ;;  %v2661_v15 = vld [vmem:[%s3316_s3 + $0x90] sm:$0xff]  }
 0x104   : > { %v946_v25 = vrot.slane %v2636_v24, 2  ;;  %v2668_v24 = vld [vmem:[%s3317_s4 + $0x70] sm:$0xff]   ;;  %v2671_v27 = vld [vmem:[%s3317_s4 + $0x20] sm:$0xff]  }
 0x105   : > { %2372 = vmatmul.mubr.msk.bf16.vlgmr.msra.gmra.mxu0 %vm718_vm9, %v687_v17  ;;  %v2663_v17 = vld [vmem:[%s3316_s3 + $0x60] sm:$0xff]  }
 0x106   : > { %2406 = vmatpush3.bf16.msra.mxu1 %v2627_v14  ;;  %2390 = vmatpush3.bf16.msra.mxu0 %v2629_v16  ;;  %v2660_v14 = vld [vmem:[%s3316_s3 + $0x70] sm:$0xff]   ;;  %v2662_v16 = vld [vmem:[%s3316_s3 + $0x68] sm:$0xff]  }
 0x107   : > { %2407 = vmatprep.subr.bf16.mxu1 %v2762_v0  ;;  %2391 = vmatprep.subr.bf16.mxu0 %v2762_v0 }
 0x108   : > { %2399 = vmatprep.mubr.msk.bf16.mxu0 %vm2763_vm1, %v2762_v0 }
 0x10a   : > { %2408 = vmatpush3.bf16.msra.mxu1 %v2630_v18  ;;  %2392 = vmatpush3.bf16.msra.mxu0 %v2631_v19  ;;  %v2664_v19 = vld [vmem:[#allocation3] ss:$0 sps:$4 sm:$0x66]  }
 0x10b   : > { %2409 = vmatprep.subr.bf16.mxu1 %v2762_v0  ;;  %2393 = vmatprep.subr.bf16.mxu0 %v2762_v0 }
 0x10e   : > { %2410 = vmatpush3.bf16.msra.mxu1 %v2632_v20  ;;  %2394 = vmatpush3.bf16.msra.mxu0 %v2633_v21  ;;  %v1257_v20 = vrot.slane %v2664_v19, 1  ;;  %v2665_v21 = vld [vmem:[%s3317_s4 + $0x38] sm:$0xff]  }
 0x10f   : > { %2411 = vmatprep.subr.bf16.mxu1 %v2762_v0  ;;  %2395 = vmatprep.subr.bf16.mxu0 %v2762_v0 }
 0x112   : > { %2412 = vmatpush3.bf16.msra.mxu1 %v2634_v22  ;;  %2396 = vmatpush3.bf16.msra.mxu0 %v2635_v23  ;;  %v2666_v22 = vld [vmem:[%s3317_s4 + $0x78] sm:$0xff]   ;;  %v2667_v23 = vld [vmem:[%s3317_s4 + $0x30] sm:$0xff]  }
 0x113   : > { %2433 = vmatprep.subr.bf16.mxu1 %v2762_v0  ;;  %2397 = vmatprep.subr.bf16.mxu0 %v2762_v0 }
 0x115   : > { %2414 = vmatmul.mubr.msk.bf16.vlgmr.msra.gmra.mxu1 %vm718_vm9, %v946_v25  ;;  %v2669_v25 = vld [vmem:[%s3317_s4 + $0x28] sm:$0xff]  }
 0x116   : > { %2445 = vmatprep.mubr.msk.bf16.mxu1 %vm2763_vm1, %v2762_v0  ;;  %2398 = vmatpush3.bf16.msra.mxu0 %v2637_v26  ;;  %v2670_v26 = vld [vmem:[%s3317_s4 + $0x68] sm:$0xff]  }
 0x117   : > { %2417 = vmatprep.subr.bf16.mxu0 %v2762_v0  ;;  %2434 = vmatpush3.bf16.msra.mxu1 %v2639_v30  ;;  %v2673_v30 = vld [vmem:[%s3317_s4 + $0x18] sm:$0xff]  }
 0x118   : > { %2435 = vmatprep.subr.bf16.mxu1 %v2762_v0 }
 0x119   : > { %2400 = vmatmul.mubr.msk.bf16.vlgmr.msra.gmra.mxu0 %vm718_vm9, %v853_v29  ;;  %v2672_v29 = vld [vmem:[%s3317_s4 + $0x60] sm:$0xff]  }
 0x11a   : > { %2429 = vmatprep.mubr.msk.bf16.mxu0 %vm2763_vm1, %v2762_v0  ;;  %2418 = vmatpush3.bf16.msra.mxu0 %v2641_v32  ;;  %v2675_v32 = vld [vmem:[%s3317_s4 + $0x10] sm:$0xff]  }
 0x11b   : > { %2436 = vmatpush3.bf16.msra.mxu1 %v2640_v31  ;;  %2419 = vmatprep.subr.bf16.mxu0 %v2762_v0  ;;  %v2674_v31 = vld [vmem:[%s3317_s4 + $0x58] sm:$0xff]  }
 0x11c   : > { %2437 = vmatprep.subr.bf16.mxu1 %v2762_v0 }
 0x11e   : > { %2420 = vmatpush3.bf16.msra.mxu0 %v2643_v34  ;;  %v2677_v34 = vld [vmem:[%s3317_s4 + $0x8] sm:$0xff]  }
 0x11f   : > { %2438 = vmatpush3.bf16.msra.mxu1 %v2642_v33  ;;  %2421 = vmatprep.subr.bf16.mxu0 %v2762_v0  ;;  %v2676_v33 = vld [vmem:[%s3317_s4 + $0x50] sm:$0xff]  }
 0x120   : > { %2439 = vmatprep.subr.bf16.mxu1 %v2762_v0 }
 0x122   : > { %2422 = vmatpush3.bf16.msra.mxu0 %v2645_v35  ;;  %v2679_v35 = vld [vmem:[%s3317_s4] sm:$0xff]  }
 0x123   : > { %2440 = vmatpush3.bf16.msra.mxu1 %v2644_v28  ;;  %2423 = vmatprep.subr.bf16.mxu0 %v2762_v0  ;;  %v2678_v28 = vld [vmem:[%s3317_s4 + $0x48] sm:$0xff]  }
 0x124   : > { %2441 = vmatprep.subr.bf16.mxu1 %v2762_v0 }
 0x126   : > { %2424 = vmatpush3.bf16.msra.mxu0 %v2647_v37  ;;  %v1449_v37 = vld [vmem:[#allocation4] sm:$0x1] }
 0x127   : > { %2442 = vmatpush3.bf16.msra.mxu1 %v2646_v36  ;;  %2425 = vmatprep.subr.bf16.mxu0 %v2762_v0  ;;  %v2680_v36 = vld [vmem:[%s3317_s4 + $0x40] sm:$0xff]  }
 0x128   : > { %2443 = vmatprep.subr.bf16.mxu1 %v2762_v0 }
 0x12a   : > { %2426 = vmatpush3.bf16.msra.mxu0 %v2649_v39  ;;  %v2684_v39 = vld [vmem:[%s3317_s4 + $0xf0] sm:$0xff]  }
 0x12b   : > { %2444 = vmatpush3.bf16.msra.mxu1 %v2648_v38  ;;  %2427 = vmatprep.subr.bf16.mxu0 %v2762_v0  ;;  %v2681_v38 = vld [vmem:[%s3317_s4 + $0xf8] sm:$0xff]  }
 0x12c   : > { %2465 = vmatprep.subr.bf16.mxu1 %v2762_v0 }
 0x12e   : > { %2428 = vmatpush3.bf16.msra.mxu0 %v2651_v40  ;;  %v2686_v40 = vld [vmem:[%s3317_s4 + $0xe8] sm:$0xff]  }
 0x12f   : > { %2449 = vmatprep.subr.bf16.mxu0 %v2762_v0 }
 0x1c1   : > { %v829_v41 = vpop.f32.mrf.mxu1 }
 0x1c3   : > { %v2387_v42 = vpop.f32.mrf.mxu1 }
 0x1c4   : > { %v2690_v42 = vld [vmem:[%s3317_s4 + $0xd8] sm:$0xff]  }
 0x1c5   : > { %v832_v43 = vpop.f32.mrf.mxu1  ;;  %v756_v44 = vpop.f32.mrf.mxu0 }
 0x1c6   : > { %v830_v51 = vadd.f32 %v829_v41, %v756_v44  ;;  %v2688_v41 = vld [vmem:[%s3317_s4 + $0xe0] sm:$0xff]   ;;  %v2692_v43 = vld [vmem:[%s3317_s4 + $0xd0] sm:$0xff]   ;;  %v2694_v44 = vld [vmem:[%s3317_s4 + $0xc8] sm:$0xff]  }
 0x1c7   : > { %v2388_v45 = vpop.f32.mrf.mxu1  ;;  %v2373_v46 = vpop.f32.mrf.mxu0 }
 0x1c8   : > { %v2696_v45 = vld [vmem:[%s3317_s4 + $0xc0] sm:$0xff]   ;;  %v2697_v46 = vld [vmem:[#allocation4] ss:$0 sps:$4 sm:$0x88]  }
 0x1c9   : > { %v759_v47 = vpop.f32.mrf.mxu0 }
 0x1ca   : > { %v1798_v47 = vrot.slane %v2697_v46, 3 }
 0x1cb   : > { %v2374_v48 = vpop.f32.mrf.mxu0 }
 0x1d5   : > { %v1014_v49 = vpop.f32.mrf.mxu1 }
 0x1d7   : > { %v2415_v50 = vpop.f32.mrf.mxu1 }
 0x1d9   : > { %v1017_v52 = vpop.f32.mrf.mxu1  ;;  %v921_v53 = vpop.f32.mrf.mxu0 }
 0x1da   : > { %v927_v54 = vadd.f32 %v921_v53, %v830_v51 }
 0x1db   : > { %v2416_v55 = vpop.f32.mrf.mxu1  ;;  %v2401_v57 = vpop.f32.mrf.mxu0 }
 0x1dc   : > { %v1020_v58 = vadd.f32 %v1014_v49, %v927_v54 }
 0x1dd   : > { %v924_v59 = vpop.f32.mrf.mxu0 }
 0x1de   : > { %v1028_v60 = vadd.f32 %v2066_v56, %v1020_v58 }
 0x1df   : > { %v2402_v61 = vpop.f32.mrf.mxu0 }
 0x1e0   : > { %v1029_v62 = vmax.f32 %v1028_v60, 0.0 }
 0x1e2   : > { %v1030_v63 = vpack.c.bf16 %v1029_v62, %v1029_v62 }
 0x1e4   : > { %v1034_v1 = vrot.slane %v1030_v63, 5  ;;  %1038 = vst.msk [vmem:[#allocation3] sm:$0x2] %vm338_vm11, %v1030_v63  ;;  %v2068_v2 = vrot.slane %v1030_v63, 10 }
 0x1e6   : > { %1037 = vst.msk [vmem:[#allocation3] sm:$0x8] %vm1036_vm12, %v1034_v1  ;;  %v2682_v1 = vld [vmem:[#allocation4] ss:$0 sps:$4 sm:$0x44]  }
 0x1e7   : > { %1042 = vst.msk [vmem:[#allocation3 + $0x4] sm:$0x1] %vm336_vm10, %v2068_v2  ;;  %v2683_v2 = vld [vmem:[%s3317_s4 + $0xb8] sm:$0xff]  }
 0x1eb   : > { %v1047_v4 = vld [vmem:[#allocation3] sm:$0x3] }
 0x1ec   : > { %2446 = vmatmul.mubr.msk.bf16.vlgmr.msra.gmra.mxu1 %vm1117_vm13, %v1047_v4  ;;  %v2685_v4 = vld [vmem:[%s3317_s4 + $0xb0] sm:$0xff]  }
 0x1ed   : > { %2466 = vmatpush3.bf16.msra.mxu1 %v2650_v3  ;;  %2477 = vmatprep.mubr.msk.bf16.mxu1 %vm2763_vm1, %v2762_v0  ;;  %v1487_v3 = vrot.slane %v2682_v1, 2 }
 0x1ee   : > { %v2653_v6 = vld [vmem:[#allocation3] sm:$0x18]   ;;  %2467 = vmatprep.subr.bf16.mxu1 %v2762_v0 }
 0x1ef   : > { %v1080_v8 = vrot.slane %v2653_v6, 3  ;;  %v1338_v18 = vld [vmem:[#allocation3 + $0x4] sm:$0x3]  ;;  %v2689_v6 = vld [vmem:[%s3317_s4 + $0xa0] sm:$0xff]  }
 0x1f1   : > { %2468 = vmatpush3.bf16.msra.mxu1 %v2652_v5  ;;  %2430 = vmatmul.mubr.msk.bf16.vlgmr.msra.gmra.mxu0 %vm1117_vm13, %v1080_v8  ;;  %v2687_v5 = vld [vmem:[%s3317_s4 + $0xa8] sm:$0xff]   ;;  %v2693_v8 = vld [vmem:[%s3317_s4 + $0x90] sm:$0xff]  }
 0x1f2   : > { %2450 = vmatpush3.bf16.msra.mxu0 %v2654_v7  ;;  %2469 = vmatprep.subr.bf16.mxu1 %v2762_v0  ;;  %v2691_v7 = vld [vmem:[%s3317_s4 + $0x98] sm:$0xff]  }
 0x1f3   : > { %2451 = vmatprep.subr.bf16.mxu0 %v2762_v0  ;;  %2461 = vmatprep.mubr.msk.bf16.mxu0 %vm2763_vm1, %v2762_v0 }
 0x1f5   : > { %2470 = vmatpush3.bf16.msra.mxu1 %v2655_v9  ;;  %v2695_v9 = vld [vmem:[%s3317_s4 + $0x88] sm:$0xff]  }
 0x1f6   : > { %2452 = vmatpush3.bf16.msra.mxu0 %v2656_v10  ;;  %2471 = vmatprep.subr.bf16.mxu1 %v2762_v0  ;;  %v2698_v10 = vld [vmem:[%s3317_s4 + $0x80] sm:$0xff]  }
 0x1f7   : > { %2453 = vmatprep.subr.bf16.mxu0 %v2762_v0 }
 0x1f9   : > { %2472 = vmatpush3.bf16.msra.mxu1 %v2657_v11  ;;  %v2699_v11 = vld [vmem:[#allocation4] ss:$0 sps:$4 sm:$0x22]  }
 0x1fa   : > { %2454 = vmatpush3.bf16.msra.mxu0 %v2658_v12  ;;  %2473 = vmatprep.subr.bf16.mxu1 %v2762_v0  ;;  %v1686_v12 = vrot.slane %v2699_v11, 1 }
 0x1fb   : > { %2455 = vmatprep.subr.bf16.mxu0 %v2762_v0 }
 0x1fd   : > { %2474 = vmatpush3.bf16.msra.mxu1 %v2659_v13 }
 0x1fe   : > { %2456 = vmatpush3.bf16.msra.mxu0 %v2660_v14  ;;  %2475 = vmatprep.subr.bf16.mxu1 %v2762_v0 }
 0x1ff   : > { %2457 = vmatprep.subr.bf16.mxu0 %v2762_v0 }
 0x201   : > { %2476 = vmatpush3.bf16.msra.mxu1 %v2661_v15 }
 0x202   : > { %2458 = vmatpush3.bf16.msra.mxu0 %v2662_v16  ;;  %2501 = vmatprep.subr.bf16.mxu1 %v2762_v0 }
 0x203   : > { %2459 = vmatprep.subr.bf16.mxu0 %v2762_v0 }
 0x204   : > { %2478 = vmatmul.mubr.msk.bf16.vlgmr.msra.gmra.mxu1 %vm1117_vm13, %v1338_v18 }
 0x205   : > { %2517 = vmatprep.mubr.msk.bf16.mxu1 %vm2763_vm1, %v2762_v0  ;;  %2502 = vmatpush3.bf16.msra.mxu1 %v2665_v21 }
 0x206   : > { %2460 = vmatpush3.bf16.msra.mxu0 %v2663_v17  ;;  %2503 = vmatprep.subr.bf16.mxu1 %v2762_v0 }
 0x207   : > { %2481 = vmatprep.subr.bf16.mxu0 %v2762_v0 }
 0x209   : > { %2462 = vmatmul.mubr.msk.bf16.vlgmr.msra.gmra.mxu0 %vm1117_vm13, %v1257_v20  ;;  %2504 = vmatpush3.bf16.msra.mxu1 %v2667_v23 }
 0x20a   : > { %2497 = vmatprep.mubr.msk.bf16.mxu0 %vm2763_vm1, %v2762_v0  ;;  %2482 = vmatpush3.bf16.msra.mxu0 %v2666_v22 }
 0x20b   : > { %2483 = vmatprep.subr.bf16.mxu0 %v2762_v0  ;;  %2505 = vmatprep.subr.bf16.mxu1 %v2762_v0 }
 0x20d   : > { %2506 = vmatpush3.bf16.msra.mxu1 %v2669_v25 }
 0x20e   : > { %2484 = vmatpush3.bf16.msra.mxu0 %v2668_v24  ;;  %2507 = vmatprep.subr.bf16.mxu1 %v2762_v0 }
 0x20f   : > { %2485 = vmatprep.subr.bf16.mxu0 %v2762_v0 }
 0x211   : > { %2508 = vmatpush3.bf16.msra.mxu1 %v2671_v27  ;;  %v2220_v27 = vld [vmem:[%s3321_s8] ss:$0 sm:$0xff] }
 0x212   : > { %2486 = vmatpush3.bf16.msra.mxu0 %v2670_v26  ;;  %2509 = vmatprep.subr.bf16.mxu1 %v2762_v0 }
 0x213   : > { %2487 = vmatprep.subr.bf16.mxu0 %v2762_v0 }
 0x215   : > { %2510 = vmatpush3.bf16.msra.mxu1 %v2673_v30 }
 0x216   : > { %2488 = vmatpush3.bf16.msra.mxu0 %v2672_v29  ;;  %2511 = vmatprep.subr.bf16.mxu1 %v2762_v0 }
 0x217   : > { %2489 = vmatprep.subr.bf16.mxu0 %v2762_v0 }
 0x219   : > { %2512 = vmatpush3.bf16.msra.mxu1 %v2675_v32 }
 0x21a   : > { %2490 = vmatpush3.bf16.msra.mxu0 %v2674_v31  ;;  %2513 = vmatprep.subr.bf16.mxu1 %v2762_v0 }
 0x21b   : > { %2491 = vmatprep.subr.bf16.mxu0 %v2762_v0 }
 0x21d   : > { %2514 = vmatpush3.bf16.msra.mxu1 %v2677_v34 }
 0x21e   : > { %2492 = vmatpush3.bf16.msra.mxu0 %v2676_v33  ;;  %2515 = vmatprep.subr.bf16.mxu1 %v2762_v0 }
 0x21f   : > { %2493 = vmatprep.subr.bf16.mxu0 %v2762_v0 }
 0x221   : > { %2516 = vmatpush3.bf16.msra.mxu1 %v2679_v35 }
 0x222   : > { %2494 = vmatpush3.bf16.msra.mxu0 %v2678_v28  ;;  %2541 = vmatprep.subr.bf16.mxu1 %v2762_v0 }
 0x223   : > { %2495 = vmatprep.subr.bf16.mxu0 %v2762_v0 }
 0x224   : > { %2518 = vmatmul.mubr.bf16.vlgmr.msra.gmra.mxu1 %v1449_v37 }
 0x225   : > { %2542 = vmatpush3.bf16.msra.mxu1 %v2681_v38  ;;  %2557 = vmatprep.mubr.msk.bf16.mxu1 %vm2763_vm1, %v2762_v0 }
 0x226   : > { %2496 = vmatpush3.bf16.msra.mxu0 %v2680_v36  ;;  %2543 = vmatprep.subr.bf16.mxu1 %v2762_v0 }
 0x227   : > { %2521 = vmatprep.subr.bf16.mxu0 %v2762_v0 }
 0x229   : > { %2544 = vmatpush3.bf16.msra.mxu1 %v2684_v39  ;;  %2498 = vmatmul.mubr.bf16.vlgmr.msra.gmra.mxu0 %v1487_v3 }
 0x22a   : > { %2545 = vmatprep.subr.bf16.mxu1 %v2762_v0  ;;  %2522 = vmatpush3.bf16.msra.mxu0 %v2683_v2 }
 0x22b   : > { %2537 = vmatprep.mubr.msk.bf16.mxu0 %vm2763_vm1, %v2762_v0  ;;  %2523 = vmatprep.subr.bf16.mxu0 %v2762_v0 }
 0x22d   : > { %2546 = vmatpush3.bf16.msra.mxu1 %v2686_v40 }
 0x22e   : > { %2547 = vmatprep.subr.bf16.mxu1 %v2762_v0  ;;  %2524 = vmatpush3.bf16.msra.mxu0 %v2685_v4 }
 0x22f   : > { %2525 = vmatprep.subr.bf16.mxu0 %v2762_v0 }
 0x231   : > { %2548 = vmatpush3.bf16.msra.mxu1 %v2688_v41 }
 0x232   : > { %2549 = vmatprep.subr.bf16.mxu1 %v2762_v0  ;;  %2526 = vmatpush3.bf16.msra.mxu0 %v2687_v5 }
 0x233   : > { %2527 = vmatprep.subr.bf16.mxu0 %v2762_v0 }
 0x235   : > { %2550 = vmatpush3.bf16.msra.mxu1 %v2690_v42 }
 0x236   : > { %2551 = vmatprep.subr.bf16.mxu1 %v2762_v0  ;;  %2528 = vmatpush3.bf16.msra.mxu0 %v2689_v6 }
 0x237   : > { %2529 = vmatprep.subr.bf16.mxu0 %v2762_v0 }
 0x239   : > { %2552 = vmatpush3.bf16.msra.mxu1 %v2692_v43 }
 0x23a   : > { %2553 = vmatprep.subr.bf16.mxu1 %v2762_v0  ;;  %2530 = vmatpush3.bf16.msra.mxu0 %v2691_v7 }
 0x23b   : > { %2531 = vmatprep.subr.bf16.mxu0 %v2762_v0 }
 0x23d   : > { %2554 = vmatpush3.bf16.msra.mxu1 %v2694_v44 }
 0x23e   : > { %2555 = vmatprep.subr.bf16.mxu1 %v2762_v0  ;;  %2532 = vmatpush3.bf16.msra.mxu0 %v2693_v8 }
 0x23f   : > { %2533 = vmatprep.subr.bf16.mxu0 %v2762_v0 }
 0x241   : > { %2556 = vmatpush3.bf16.msra.mxu1 %v2696_v45 }
 0x242   : > { %2534 = vmatpush3.bf16.msra.mxu0 %v2695_v9 }
 0x243   : > { %2535 = vmatprep.subr.bf16.mxu0 %v2762_v0 }
 0x244   : > { %2558 = vmatmul.mubr.bf16.vlgmr.msra.gmra.mxu1 %v1798_v47 }
 0x246   : > { %2536 = vmatpush3.bf16.msra.mxu0 %v2698_v10 }
 0x249   : > { %2538 = vmatmul.mubr.bf16.vlgmr.msra.gmra.mxu0 %v1686_v12 }
 0x2ac   : > { %v1234_v48 = vpop.f32.mrf.mxu1 }
 0x2ae   : > { %v2447_v49 = vpop.f32.mrf.mxu1 }
 0x2b0   : > { %v1237_v50 = vpop.f32.mrf.mxu1 }
 0x2b1   : > { %v1155_v51 = vpop.f32.mrf.mxu0 }
 0x2b2   : > { %v2448_v52 = vpop.f32.mrf.mxu1 }
 0x2b3   : > { %v2431_v53 = vpop.f32.mrf.mxu0 }
 0x2b5   : > { %v1158_v54 = vpop.f32.mrf.mxu0 }
 0x2b7   : > { %v2432_v55 = vpop.f32.mrf.mxu0 }
 0x2c4   : > { %v1425_v56 = vpop.f32.mrf.mxu1 }
 0x2c6   : > { %v2479_v57 = vpop.f32.mrf.mxu1 }
 0x2c8   : > { %v1428_v58 = vpop.f32.mrf.mxu1 }
 0x2c9   : > { %v1331_v59 = vpop.f32.mrf.mxu0 }
 0x2ca   : > { %v2480_v60 = vpop.f32.mrf.mxu1 }
 0x2cb   : > { %v2463_v61 = vpop.f32.mrf.mxu0 }
 0x2cd   : > { %v1334_v62 = vpop.f32.mrf.mxu0 }
 0x2cf   : > { %v2464_v63 = vpop.f32.mrf.mxu0 }
 0x2e4   : > { %v1659_v13 = vpop.f32.mrf.mxu1 }
 0x2e6   : > { %v2519_v14 = vpop.f32.mrf.mxu1 }
 0x2e8   : > { %v1662_v15 = vpop.f32.mrf.mxu1 }
 0x2e9   : > { %v1571_v21 = vpop.f32.mrf.mxu0 }
 0x2ea   : > { %v2520_v16 = vpop.f32.mrf.mxu1  ;;  %v1660_v0 = vadd.f32 %v1659_v13, %v1571_v21 }
 0x2eb   : > { %v2499_v22 = vpop.f32.mrf.mxu0 }
 0x2ed   : > { %v1574_v23 = vpop.f32.mrf.mxu0 }
 0x2ef   : > { %v2500_v24 = vpop.f32.mrf.mxu0 }
 0x304   : > { %v1882_v17 = vpop.f32.mrf.mxu1 }
 0x306   : > { %v2559_v18 = vpop.f32.mrf.mxu1 }
 0x308   : > { %v1885_v19 = vpop.f32.mrf.mxu1 }
 0x309   : > { %v1770_v25 = vpop.f32.mrf.mxu0 }
 0x30a   : > { %v2560_v20 = vpop.f32.mrf.mxu1  ;;  %v1776_v26 = vadd.f32 %v1770_v25, %v1660_v0 }
 0x30b   : > { %v2539_v29 = vpop.f32.mrf.mxu0 }
 0x30c   : > { %v1888_v30 = vadd.f32 %v1882_v17, %v1776_v26 }
 0x30d   : > { %v1773_v31 = vpop.f32.mrf.mxu0 }
 0x30e   : > { %v1896_v32 = vadd.f32 %v2220_v27, %v1888_v30 }
 0x30f   : > { %v2540_v33 = vpop.f32.mrf.mxu0 }
 0x310   : > { %v1897_v34 = vmax.f32 %v1896_v32, 0.0 }
 0x312   : > { %1899 = vst.msk [vmem:[%s325_s20] sm:$0x3] %vm1898_vm14, %v1897_v34 }
 0x313   : > { %2713 = shalt.err (!%p2710_p3)
}
 0x314   : > { %s2714_s13 = scalar_lea.hbm %s1912_s24, 32  ;;  %s2718_s16 = scalar_lea.hbm %s3322_s9, 64 }
 0x315   : > { %p2715_p4 = scmp.ne.s32.totalorder %s1912_s24, %s2714_s13  ;;  %p2719_p9 = scmp.lt.s32.totalorder %s1912_s24, %s3322_s9 }
 0x316   : > { %p2720_p10 = scmp.lt.s32.totalorder %s2718_s16, %s2714_s13 }
 0x317   : > { %p2716_p7 = pnand %p2715_p4, %p2854_p5 }
 0x318   : > { %p2721_p11 = por %p2720_p10, %p2719_p9 }
 0x319   : > { %p2717_p8 = pneg %p2716_p7 }
 0x31b   : > { %p2722_p12 = pnand %p2721_p11, %p2717_p8 }
 0x31d   : > { %2725 = shalt.err (!%p2722_p12)
}
 0x31e   : > { %2562 = dma.vmem_to_hbm [thread:$0]  (%p2854_p5), %s1915_s21, 32, %s1912_s24, %s1901_s25  }
 0x31f PF: > { %p2568_p13 = scmp.ge.s32.totalorder %s2760_s12, 2  ;;  %s1926_s23 = sand.u32 1, %s2748_s30  }
 0x320   : > { %s1927_s26 = scalar_lea.sflag [#allocation6], %s1926_s23 }
 0x321   : > { %p2565_p0 = pnand %p2568_p13, %p2858_p6 }
 0x323   : > { %p2566_p1 = pneg %p2565_p0 }
 0x325   : > { %2743 = dma.done.wait (%p2566_p1), %s1927_s26, 32  }
 0x326   : > { %2745 = vsyncadd (%p2566_p1), %s1927_s26, 4294967264  ;;  %p19_p2 = scmp.ge.s32.totalorder %s2841_s14, 4   ;;  %s3325_s30 = smov %s2752_s10 }
 0x327   : > { %s3326_s10 = smov %s2756_s11  ;;  %s3327_s11 = smov %s2852_s17 }
 0x328   : > { %s3328_s12 = smov %s2841_s14  ;;  %21 = sbr.rel (!%p19_p2) target bundleno = 3 (0x3), region = 103 }
 0x32d   :  { %1932 = vsyncpa [#allocation6], 1 }
 0x32e   :  { %1934 = vsyncpa [#allocation6 + $0x1], 1 }

</bundles_post_ra>
